<compile_context>
chip_gen: v7x
topology: tpu7x:2x2x1
jax: 0.10.0
libtpu: 0.0.40
codegen_flags: <defaults>
</compile_context>

<pallas_src>
import functools

import jax
import jax.numpy as jnp
from jax.experimental import pallas as pl
from jax.experimental.pallas import tpu as pltpu

_BN_EPS = 1e-5
_VMEM_LIMIT_BYTES = 32 << 20   # inside v5e/v6e (128 MiB) and v7x (64 MiB) VMEM
_MIN_PALLAS_M = 128            # below this the output lane width is < 128


def _vmem_budget_bytes():
    """Generation-aware operand budget for the single-block fast path."""
    try:
        cap = getattr(pltpu.get_tpu_info(), "vmem_capacity_bytes", 64 << 20)
    except Exception:
        cap = 64 << 20
    # Leave headroom for buffering and compiler scratch; stay under the
    # explicit vmem_limit_bytes below.
    return min(cap // 4, 12 << 20)


# ----------------------------------------------------------------------------
# Pallas kernel: one conv layer as  W^T(C,9C) @ A^T(9C,M)  + BatchNorm
# (batch statistics) + optional post-BN residual add.  Whole layer in VMEM.
# ----------------------------------------------------------------------------
def _conv_bn_kernel(*refs, inv_m, has_res):
    if has_res:
        at_ref, wt_ref, gb_ref, res_ref, o_ref = refs
    else:
        at_ref, wt_ref, gb_ref, o_ref = refs
        res_ref = None

    # (C, M) f32  <-  (C, 9C) bf16 @ (9C, M) bf16 on the MXU.
    y = jnp.dot(wt_ref[...], at_ref[...], preferred_element_type=jnp.float32)

    gamma = gb_ref[:, 0:1]                        # (C, 1)
    beta = gb_ref[:, 1:2]                         # (C, 1)

    # Single-pass batch statistics over the whole M (training-mode BN).
    mu = jnp.sum(y, axis=1, keepdims=True) * inv_m
    var = jnp.maximum(jnp.sum(y * y, axis=1, keepdims=True) * inv_m - mu * mu,
                      0.0)
    inv = jax.lax.rsqrt(var + _BN_EPS)
    scale = gamma * inv
    shift = beta - mu * scale
    out = y * scale + shift
    if res_ref is not None:                       # fused post-BN skip add
        out = out + res_ref[...].astype(jnp.float32)
    o_ref[...] = out.astype(o_ref.dtype)


def _conv_bn_pallas(at, wt, gb, res, out_dtype):
    k, m = at.shape                               # k = 9*C
    c = wt.shape[0]
    kernel = functools.partial(_conv_bn_kernel, inv_m=1.0 / m,
                               has_res=res is not None)

    in_specs = [
        pl.BlockSpec((k, m), lambda i: (0, 0)),   # patch matrix A^T (bf16)
        pl.BlockSpec((c, k), lambda i: (0, 0)),   # weights W^T (bf16)
        pl.BlockSpec((c, 2), lambda i: (0, 0)),   # gamma | beta (f32)
    ]
    args = [at, wt, gb]
    if res is not None:
        in_specs.append(pl.BlockSpec((c, m), lambda i: (0, 0)))
        args.append(res)

    return pl.pallas_call(
        kernel,
        out_shape=jax.ShapeDtypeStruct((c, m), out_dtype),
        grid=(1,),
        in_specs=in_specs,
        out_specs=pl.BlockSpec((c, m), lambda i: (0, 0)),
        compiler_params=pltpu.CompilerParams(
            dimension_semantics=("arbitrary",),
            vmem_limit_bytes=_VMEM_LIMIT_BYTES),
    )(*args)


def _conv_bn_jnp(at, wt, gb, res, out_dtype):
    """Fallback with identical math for tiny / over-budget layers (XLA fuses)."""
    y = jnp.dot(wt, at, preferred_element_type=jnp.float32)
    mu = jnp.mean(y, axis=1, keepdims=True)
    var = jnp.maximum(jnp.mean(y * y, axis=1, keepdims=True) - mu * mu, 0.0)
    inv = jax.lax.rsqrt(var + _BN_EPS)
    scale = gb[:, 0:1] * inv
    shift = gb[:, 1:2] - mu * scale
    out = y * scale + shift
    if res is not None:
        out = out + res.astype(jnp.float32)
    return out.astype(out_dtype)


# ----------------------------------------------------------------------------
# BasicConv equivalent: 3x3 conv (bias=False) + BatchNorm2d (batch stats)
# ----------------------------------------------------------------------------
def _conv_out_hw(h, w, stride, padding, dilation):
    span = 2 * dilation                           # dilation * (kernel_size - 1)
    ho = (h + 2 * padding - span - 1) // stride + 1
    wo = (w + 2 * padding - span - 1) // stride + 1
    return ho, wo


def conv_bn(x, params, residual=None, *, stride, padding, dilation,
            out_dtype=jnp.bfloat16):
    """x: (C, N, H, W).  residual: optional (C, N, Ho, Wo), added post-BN."""
    w_mat, gb = params                            # (C, 9C) f32, (C, 2) f32
    c, n, h, w = x.shape
    ho, wo = _conv_out_hw(h, w, stride, padding, dilation)
    m = n * ho * wo

    # Cast to bf16 *before* padding / im2col so the 9x patch blow-up is half
    # width; the MXU consumes bf16 anyway.
    xp = jnp.pad(x.astype(jnp.bfloat16),
                 ((0, 0), (0, 0), (padding, padding), (padding, padding)))

    # im2col (layout glue, fused by XLA): row (kh*3+kw)*C + cin of A^T.
    taps = []
    for kh in range(3):
        for kw in range(3):
            h0 = kh * dilation
            w0 = kw * dilation
            taps.append(
                xp[:, :, h0:h0 + (ho - 1) * stride + 1:stride,
                         w0:w0 + (wo - 1) * stride + 1:stride].reshape(c, m))
    at = jnp.concatenate(taps, axis=0)                          # (9C, M) bf16
    wt = w_mat.astype(jnp.bfloat16)                             # (C, 9C) bf16
    res = (None if residual is None
           else residual.reshape(c, m).astype(jnp.float32))

    work_bytes = (at.size * 2 + wt.size * 2 + gb.size * 4
                  + (0 if res is None else res.size * 4)
                  + c * m * jnp.dtype(out_dtype).itemsize)
    use_pallas = (m >= _MIN_PALLAS_M) and (2 * work_bytes <= _vmem_budget_bytes())

    if use_pallas:
        yt = _conv_bn_pallas(at, wt, gb, res, out_dtype)
    else:
        yt = _conv_bn_jnp(at, wt, gb, res, out_dtype)
    return yt.reshape(c, n, ho, wo)


# ----------------------------------------------------------------------------
# Bilinear interpolation, align_corners=True (tiny interpolation matrices)
# ----------------------------------------------------------------------------
def _resize_mat(src, dst):
    if src == 1:
        return jnp.ones((dst, 1), jnp.float32)
    if dst == 1:
        # TODO(synk): verify single-pixel-output behaviour vs PyTorch
        # align_corners=True if this path is ever hit (not used here).
        return jnp.eye(1, src, dtype=jnp.float32)
    coords = jnp.arange(dst, dtype=jnp.float32) * ((src - 1) / (dst - 1))
    lo = jnp.clip(jnp.floor(coords).astype(jnp.int32), 0, src - 2)
    frac = coords - lo.astype(jnp.float32)
    return ((1.0 - frac)[:, None] * jax.nn.one_hot(lo, src, dtype=jnp.float32)
            + frac[:, None] * jax.nn.one_hot(lo + 1, src, dtype=jnp.float32))


def bilinear_resize(x, ht, wt):
    """x: (C, N, H, W) -> (C, N, ht, wt), bilinear, align_corners=True."""
    c, n, h, w = x.shape
    if (h, w) == (ht, wt):
        return x
    ah = _resize_mat(h, ht)
    aw = _resize_mat(w, wt)
    y = jnp.einsum('cnhw,ph->cnpw', x, ah)
    y = jnp.einsum('cnpw,qw->cnpq', y, aw)
    return y


# ----------------------------------------------------------------------------
# Parameter init (deterministic, shapes match the PyTorch module __init__)
# ----------------------------------------------------------------------------
def _init_basic_conv(key, channel):
    # Conv2d(channel, channel, 3, bias=False) weight: (Cout, Cin, 3, 3).
    w_oihw = 0.1 * jax.random.normal(key, (channel, channel, 3, 3), jnp.float32)
    # -> (Cout, 9*Cin), column index = (kh*3 + kw)*Cin + cin (matches im2col).
    w_mat = jnp.transpose(w_oihw, (0, 2, 3, 1)).reshape(channel, 9 * channel)
    gb = jnp.concatenate([jnp.ones((channel, 1), jnp.float32),     # BN gamma
                          jnp.zeros((channel, 1), jnp.float32)],   # BN beta
                         axis=1)
    return w_mat, gb


def init_usrm5_2_params(key, channel):
    names = ['conv1', 'conv2', 'conv3', 'conv4', 'conv5',
             'conv_rev1', 'conv_rev2', 'conv_rev3', 'conv_rev4', 'conv_sum']
    keys = jax.random.split(key, len(names))
    return {n: _init_basic_conv(k, channel) for n, k in zip(names, keys)}


# ----------------------------------------------------------------------------
# USRM5_2 forward
# ----------------------------------------------------------------------------
def usrm5_2_forward(params, x_nchw, high_nchw, gi_nchw):
    # Internal layout (C, N, H, W): channels on sublanes, flattened spatial on
    # the 128-lane axis inside the kernels (lane-dense stores).
    x = jnp.transpose(x_nchw, (1, 0, 2, 3))
    high = jnp.transpose(high_nchw, (1, 0, 2, 3))
    gi = jnp.transpose(gi_nchw, (1, 0, 2, 3))
    c, n, h, w = x.shape

    h1, w1 = _conv_out_hw(h, w, 2, 1, 1)
    y1 = conv_bn(x, params['conv1'],
                 residual=bilinear_resize(high, h1, w1),
                 stride=2, padding=1, dilation=1)
    y2 = conv_bn(y1, params['conv2'], stride=2, padding=1, dilation=1)
    h3, w3 = _conv_out_hw(y2.shape[2], y2.shape[3], 2, 1, 1)
    y3 = conv_bn(y2, params['conv3'],
                 residual=bilinear_resize(gi, h3, w3),
                 stride=2, padding=1, dilation=1)
    y4 = conv_bn(y3, params['conv4'], stride=2, padding=1, dilation=1)
    y5 = conv_bn(y4, params['conv5'], stride=1, padding=2, dilation=2)

    y4up = bilinear_resize(y5, y4.shape[2], y4.shape[3])
    y4 = conv_bn(y4 + y4up, params['conv_rev1'], stride=1, padding=1, dilation=1)
    y3up = bilinear_resize(y4, y3.shape[2], y3.shape[3])
    y3 = conv_bn(y3 + y3up, params['conv_rev2'], stride=1, padding=1, dilation=1)
    y2up = bilinear_resize(y3, y2.shape[2], y2.shape[3])
    y2 = conv_bn(y2 + y2up, params['conv_rev3'], stride=1, padding=1, dilation=1)
    y1up = bilinear_resize(y2, y1.shape[2], y1.shape[3])
    y1 = conv_bn(y1 + y1up, params['conv_rev4'], stride=1, padding=1, dilation=1)

    y = bilinear_resize(y1, h, w)
    out = conv_bn(jax.nn.relu(x + y), params['conv_sum'],
                  stride=1, padding=1, dilation=1, out_dtype=jnp.float32)
    return jnp.transpose(out, (1, 0, 2, 3))                  # back to NCHW


# ----------------------------------------------------------------------------
if __name__ == "__main__":
    channel = 8
    key = jax.random.PRNGKey(0)
    kx, khi, kg, kp = jax.random.split(key, 4)

    # Four stride-2 convs => spatial dims divisible by 16.
    x = jax.random.normal(kx, (2, channel, 32, 32), jnp.float32)    # NCHW
    high = jax.random.normal(khi, (2, channel, 8, 8), jnp.float32)  # deep feat
    gi = jax.random.normal(kg, (2, channel, 2, 2), jnp.float32)     # global info

    params = init_usrm5_2_params(kp, channel)

    fwd = jax.jit(functools.partial(usrm5_2_forward, params))
    out = fwd(x, high, gi)
    jax.block_until_ready(out)

    assert out.shape == (2, channel, 32, 32), out.shape
    assert out.dtype == jnp.float32
    print("KERNEL_OK")
</pallas_src>

<mosaic_0001>
module attributes {stable_mosaic.version = 11 : i64} {
  func.func @_conv_bn_kernel(%arg0: i32, %arg1: memref<72x512xbf16, #tpu.memory_space<vmem>>, %arg2: memref<8x72xbf16, #tpu.memory_space<vmem>>, %arg3: memref<8x2xf32, #tpu.memory_space<vmem>>, %arg4: memref<8x512xf32, #tpu.memory_space<vmem>>, %arg5: memref<8x512xbf16, #tpu.memory_space<vmem>>) attributes {dimension_semantics = [#tpu.dimension_semantics<arbitrary>], iteration_bounds = array<i64: 1>, scalar_prefetch = 0 : i64, scratch_operands = 0 : i64, tpu.core_type = #tpu.core_type<tc>, window_params = [{pipeline_mode = #tpu.pipeline_mode<synchronous>, transform_indices = @transform_0, window_bounds = array<i64: 72, 512>}, {pipeline_mode = #tpu.pipeline_mode<synchronous>, transform_indices = @transform_1, window_bounds = array<i64: 8, 72>}, {pipeline_mode = #tpu.pipeline_mode<synchronous>, transform_indices = @transform_2, window_bounds = array<i64: 8, 2>}, {pipeline_mode = #tpu.pipeline_mode<synchronous>, transform_indices = @transform_3, window_bounds = array<i64: 8, 512>}, {pipeline_mode = #tpu.pipeline_mode<synchronous>, transform_indices = @transform_4, window_bounds = array<i64: 8, 512>}]} {
    %c0 = arith.constant 0 : index
    %c0_0 = arith.constant 0 : index
    %0 = vector.load %arg2[%c0, %c0_0] : memref<8x72xbf16, #tpu.memory_space<vmem>>, vector<8x72xbf16>
    %c0_1 = arith.constant 0 : index
    %c0_2 = arith.constant 0 : index
    %1 = vector.load %arg1[%c0_1, %c0_2] : memref<72x512xbf16, #tpu.memory_space<vmem>>, vector<72x512xbf16>
    %cst = arith.constant dense<0.000000e+00> : vector<8x512xf32>
    %2 = tpu.matmul %0, %1, %cst {dimension_numbers = #tpu.dot_dimension_numbers<[1], [0], [0], [1], [0, 0, 1, 1], [], []>} : vector<8x72xbf16>, vector<72x512xbf16>, vector<8x512xf32> -> vector<8x512xf32>
    %c0_3 = arith.constant 0 : index
    %c0_4 = arith.constant 0 : index
    %3 = vector.load %arg3[%c0_3, %c0_4] : memref<8x2xf32, #tpu.memory_space<vmem>>, vector<8x1xf32>
    %c0_5 = arith.constant 0 : index
    %c1 = arith.constant 1 : index
    %4 = vector.load %arg3[%c0_5, %c1] : memref<8x2xf32, #tpu.memory_space<vmem>>, vector<8x1xf32>
    %cst_6 = arith.constant dense<0.000000e+00> : vector<8xf32>
    %5 = vector.multi_reduction <add>, %2, %cst_6 [1] : vector<8x512xf32> to vector<8xf32>
    %6 = vector.shape_cast %5 : vector<8xf32> to vector<8x1xf32>
    %cst_7 = arith.constant 0.001953125 : f32
    %7 = vector.broadcast %cst_7 : f32 to vector<8x1xf32>
    %8 = arith.mulf %6, %7 : vector<8x1xf32>
    %9 = arith.mulf %2, %2 : vector<8x512xf32>
    %cst_8 = arith.constant dense<0.000000e+00> : vector<8xf32>
    %10 = vector.multi_reduction <add>, %9, %cst_8 [1] : vector<8x512xf32> to vector<8xf32>
    %11 = vector.shape_cast %10 : vector<8xf32> to vector<8x1xf32>
    %cst_9 = arith.constant 0.001953125 : f32
    %12 = vector.broadcast %cst_9 : f32 to vector<8x1xf32>
    %13 = arith.mulf %11, %12 : vector<8x1xf32>
    %14 = arith.mulf %8, %8 : vector<8x1xf32>
    %15 = arith.subf %13, %14 : vector<8x1xf32>
    %cst_10 = arith.constant 0.000000e+00 : f32
    %16 = vector.broadcast %cst_10 : f32 to vector<8x1xf32>
    %17 = arith.maximumf %15, %16 : vector<8x1xf32>
    %cst_11 = arith.constant 9.99999974E-6 : f32
    %18 = vector.broadcast %cst_11 : f32 to vector<8x1xf32>
    %19 = arith.addf %17, %18 : vector<8x1xf32>
    %20 = math.rsqrt %19 : vector<8x1xf32>
    %21 = arith.mulf %3, %20 : vector<8x1xf32>
    %22 = arith.mulf %8, %21 : vector<8x1xf32>
    %23 = arith.subf %4, %22 : vector<8x1xf32>
    %24 = vector.broadcast %21 : vector<8x1xf32> to vector<8x512xf32>
    %25 = arith.mulf %2, %24 : vector<8x512xf32>
    %26 = vector.broadcast %23 : vector<8x1xf32> to vector<8x512xf32>
    %27 = arith.addf %25, %26 : vector<8x512xf32>
    %c0_12 = arith.constant 0 : index
    %c0_13 = arith.constant 0 : index
    %28 = vector.load %arg4[%c0_12, %c0_13] : memref<8x512xf32, #tpu.memory_space<vmem>>, vector<8x512xf32>
    %29 = arith.addf %27, %28 : vector<8x512xf32>
    %30 = arith.truncf %29 : vector<8x512xf32> to vector<8x512xbf16>
    %c0_14 = arith.constant 0 : index
    %c0_15 = arith.constant 0 : index
    %31 = vector.load %arg5[%c0_14, %c0_15] : memref<8x512xbf16, #tpu.memory_space<vmem>>, vector<8x512xbf16>
    tpu.vector_store %arg5[%c0_14, %c0_15], %30 {strides = array<i32>} : memref<8x512xbf16, #tpu.memory_space<vmem>>, vector<8x512xbf16>,
    return
  }
  func.func @transform_0(%arg0: i32) -> (i32, i32) {
    %c0_i32 = arith.constant 0 : i32
    %c0_i32_0 = arith.constant 0 : i32
    %c0_i32_1 = arith.constant 0 : i32
    return %c0_i32, %c0_i32_0 : i32, i32
  }
  func.func @transform_1(%arg0: i32) -> (i32, i32) {
    %c0_i32 = arith.constant 0 : i32
    %c0_i32_0 = arith.constant 0 : i32
    %c0_i32_1 = arith.constant 0 : i32
    return %c0_i32, %c0_i32_0 : i32, i32
  }
  func.func @transform_2(%arg0: i32) -> (i32, i32) {
    %c0_i32 = arith.constant 0 : i32
    %c0_i32_0 = arith.constant 0 : i32
    %c0_i32_1 = arith.constant 0 : i32
    return %c0_i32, %c0_i32_0 : i32, i32
  }
  func.func @transform_3(%arg0: i32) -> (i32, i32) {
    %c0_i32 = arith.constant 0 : i32
    %c0_i32_0 = arith.constant 0 : i32
    %c0_i32_1 = arith.constant 0 : i32
    return %c0_i32, %c0_i32_0 : i32, i32
  }
  func.func @transform_4(%arg0: i32) -> (i32, i32) {
    %c0_i32 = arith.constant 0 : i32
    %c0_i32_0 = arith.constant 0 : i32
    %c0_i32_1 = arith.constant 0 : i32
    return %c0_i32, %c0_i32_0 : i32, i32
  }
}

module attributes {stable_mosaic.version = 11 : i64} {
  func.func @_conv_bn_kernel(%arg0: i32, %arg1: memref<72x128xbf16, #tpu.memory_space<vmem>>, %arg2: memref<8x72xbf16, #tpu.memory_space<vmem>>, %arg3: memref<8x2xf32, #tpu.memory_space<vmem>>, %arg4: memref<8x128xbf16, #tpu.memory_space<vmem>>) attributes {dimension_semantics = [#tpu.dimension_semantics<arbitrary>], iteration_bounds = array<i64: 1>, scalar_prefetch = 0 : i64, scratch_operands = 0 : i64, tpu.core_type = #tpu.core_type<tc>, window_params = [{pipeline_mode = #tpu.pipeline_mode<synchronous>, transform_indices = @transform_0, window_bounds = array<i64: 72, 128>}, {pipeline_mode = #tpu.pipeline_mode<synchronous>, transform_indices = @transform_1, window_bounds = array<i64: 8, 72>}, {pipeline_mode = #tpu.pipeline_mode<synchronous>, transform_indices = @transform_2, window_bounds = array<i64: 8, 2>}, {pipeline_mode = #tpu.pipeline_mode<synchronous>, transform_indices = @transform_3, window_bounds = array<i64: 8, 128>}]} {
    %c0 = arith.constant 0 : index
    %c0_0 = arith.constant 0 : index
    %0 = vector.load %arg2[%c0, %c0_0] : memref<8x72xbf16, #tpu.memory_space<vmem>>, vector<8x72xbf16>
    %c0_1 = arith.constant 0 : index
    %c0_2 = arith.constant 0 : index
    %1 = vector.load %arg1[%c0_1, %c0_2] : memref<72x128xbf16, #tpu.memory_space<vmem>>, vector<72x128xbf16>
    %cst = arith.constant dense<0.000000e+00> : vector<8x128xf32>
    %2 = tpu.matmul %0, %1, %cst {dimension_numbers = #tpu.dot_dimension_numbers<[1], [0], [0], [1], [0, 0, 1, 1], [], []>} : vector<8x72xbf16>, vector<72x128xbf16>, vector<8x128xf32> -> vector<8x128xf32>
    %c0_3 = arith.constant 0 : index
    %c0_4 = arith.constant 0 : index
    %3 = vector.load %arg3[%c0_3, %c0_4] : memref<8x2xf32, #tpu.memory_space<vmem>>, vector<8x1xf32>
    %c0_5 = arith.constant 0 : index
    %c1 = arith.constant 1 : index
    %4 = vector.load %arg3[%c0_5, %c1] : memref<8x2xf32, #tpu.memory_space<vmem>>, vector<8x1xf32>
    %cst_6 = arith.constant dense<0.000000e+00> : vector<8xf32>
    %5 = vector.multi_reduction <add>, %2, %cst_6 [1] : vector<8x128xf32> to vector<8xf32>
    %6 = vector.shape_cast %5 : vector<8xf32> to vector<8x1xf32>
    %cst_7 = arith.constant 7.812500e-03 : f32
    %7 = vector.broadcast %cst_7 : f32 to vector<8x1xf32>
    %8 = arith.mulf %6, %7 : vector<8x1xf32>
    %9 = arith.mulf %2, %2 : vector<8x128xf32>
    %cst_8 = arith.constant dense<0.000000e+00> : vector<8xf32>
    %10 = vector.multi_reduction <add>, %9, %cst_8 [1] : vector<8x128xf32> to vector<8xf32>
    %11 = vector.shape_cast %10 : vector<8xf32> to vector<8x1xf32>
    %cst_9 = arith.constant 7.812500e-03 : f32
    %12 = vector.broadcast %cst_9 : f32 to vector<8x1xf32>
    %13 = arith.mulf %11, %12 : vector<8x1xf32>
    %14 = arith.mulf %8, %8 : vector<8x1xf32>
    %15 = arith.subf %13, %14 : vector<8x1xf32>
    %cst_10 = arith.constant 0.000000e+00 : f32
    %16 = vector.broadcast %cst_10 : f32 to vector<8x1xf32>
    %17 = arith.maximumf %15, %16 : vector<8x1xf32>
    %cst_11 = arith.constant 9.99999974E-6 : f32
    %18 = vector.broadcast %cst_11 : f32 to vector<8x1xf32>
    %19 = arith.addf %17, %18 : vector<8x1xf32>
    %20 = math.rsqrt %19 : vector<8x1xf32>
    %21 = arith.mulf %3, %20 : vector<8x1xf32>
    %22 = arith.mulf %8, %21 : vector<8x1xf32>
    %23 = arith.subf %4, %22 : vector<8x1xf32>
    %24 = vector.broadcast %21 : vector<8x1xf32> to vector<8x128xf32>
    %25 = arith.mulf %2, %24 : vector<8x128xf32>
    %26 = vector.broadcast %23 : vector<8x1xf32> to vector<8x128xf32>
    %27 = arith.addf %25, %26 : vector<8x128xf32>
    %28 = arith.truncf %27 : vector<8x128xf32> to vector<8x128xbf16>
    %c0_12 = arith.constant 0 : index
    %c0_13 = arith.constant 0 : index
    %29 = vector.load %arg4[%c0_12, %c0_13] : memref<8x128xbf16, #tpu.memory_space<vmem>>, vector<8x128xbf16>
    tpu.vector_store %arg4[%c0_12, %c0_13], %28 {strides = array<i32>} : memref<8x128xbf16, #tpu.memory_space<vmem>>, vector<8x128xbf16>,
    return
  }
  func.func @transform_0(%arg0: i32) -> (i32, i32) {
    %c0_i32 = arith.constant 0 : i32
    %c0_i32_0 = arith.constant 0 : i32
    %c0_i32_1 = arith.constant 0 : i32
    return %c0_i32, %c0_i32_0 : i32, i32
  }
  func.func @transform_1(%arg0: i32) -> (i32, i32) {
    %c0_i32 = arith.constant 0 : i32
    %c0_i32_0 = arith.constant 0 : i32
    %c0_i32_1 = arith.constant 0 : i32
    return %c0_i32, %c0_i32_0 : i32, i32
  }
  func.func @transform_2(%arg0: i32) -> (i32, i32) {
    %c0_i32 = arith.constant 0 : i32
    %c0_i32_0 = arith.constant 0 : i32
    %c0_i32_1 = arith.constant 0 : i32
    return %c0_i32, %c0_i32_0 : i32, i32
  }
  func.func @transform_3(%arg0: i32) -> (i32, i32) {
    %c0_i32 = arith.constant 0 : i32
    %c0_i32_0 = arith.constant 0 : i32
    %c0_i32_1 = arith.constant 0 : i32
    return %c0_i32, %c0_i32_0 : i32, i32
  }
}

module attributes {stable_mosaic.version = 11 : i64} {
  func.func @_conv_bn_kernel(%arg0: i32, %arg1: memref<72x512xbf16, #tpu.memory_space<vmem>>, %arg2: memref<8x72xbf16, #tpu.memory_space<vmem>>, %arg3: memref<8x2xf32, #tpu.memory_space<vmem>>, %arg4: memref<8x512xbf16, #tpu.memory_space<vmem>>) attributes {dimension_semantics = [#tpu.dimension_semantics<arbitrary>], iteration_bounds = array<i64: 1>, scalar_prefetch = 0 : i64, scratch_operands = 0 : i64, tpu.core_type = #tpu.core_type<tc>, window_params = [{pipeline_mode = #tpu.pipeline_mode<synchronous>, transform_indices = @transform_0, window_bounds = array<i64: 72, 512>}, {pipeline_mode = #tpu.pipeline_mode<synchronous>, transform_indices = @transform_1, window_bounds = array<i64: 8, 72>}, {pipeline_mode = #tpu.pipeline_mode<synchronous>, transform_indices = @transform_2, window_bounds = array<i64: 8, 2>}, {pipeline_mode = #tpu.pipeline_mode<synchronous>, transform_indices = @transform_3, window_bounds = array<i64: 8, 512>}]} {
    %c0 = arith.constant 0 : index
    %c0_0 = arith.constant 0 : index
    %0 = vector.load %arg2[%c0, %c0_0] : memref<8x72xbf16, #tpu.memory_space<vmem>>, vector<8x72xbf16>
    %c0_1 = arith.constant 0 : index
    %c0_2 = arith.constant 0 : index
    %1 = vector.load %arg1[%c0_1, %c0_2] : memref<72x512xbf16, #tpu.memory_space<vmem>>, vector<72x512xbf16>
    %cst = arith.constant dense<0.000000e+00> : vector<8x512xf32>
    %2 = tpu.matmul %0, %1, %cst {dimension_numbers = #tpu.dot_dimension_numbers<[1], [0], [0], [1], [0, 0, 1, 1], [], []>} : vector<8x72xbf16>, vector<72x512xbf16>, vector<8x512xf32> -> vector<8x512xf32>
    %c0_3 = arith.constant 0 : index
    %c0_4 = arith.constant 0 : index
    %3 = vector.load %arg3[%c0_3, %c0_4] : memref<8x2xf32, #tpu.memory_space<vmem>>, vector<8x1xf32>
    %c0_5 = arith.constant 0 : index
    %c1 = arith.constant 1 : index
    %4 = vector.load %arg3[%c0_5, %c1] : memref<8x2xf32, #tpu.memory_space<vmem>>, vector<8x1xf32>
    %cst_6 = arith.constant dense<0.000000e+00> : vector<8xf32>
    %5 = vector.multi_reduction <add>, %2, %cst_6 [1] : vector<8x512xf32> to vector<8xf32>
    %6 = vector.shape_cast %5 : vector<8xf32> to vector<8x1xf32>
    %cst_7 = arith.constant 0.001953125 : f32
    %7 = vector.broadcast %cst_7 : f32 to vector<8x1xf32>
    %8 = arith.mulf %6, %7 : vector<8x1xf32>
    %9 = arith.mulf %2, %2 : vector<8x512xf32>
    %cst_8 = arith.constant dense<0.000000e+00> : vector<8xf32>
    %10 = vector.multi_reduction <add>, %9, %cst_8 [1] : vector<8x512xf32> to vector<8xf32>
    %11 = vector.shape_cast %10 : vector<8xf32> to vector<8x1xf32>
    %cst_9 = arith.constant 0.001953125 : f32
    %12 = vector.broadcast %cst_9 : f32 to vector<8x1xf32>
    %13 = arith.mulf %11, %12 : vector<8x1xf32>
    %14 = arith.mulf %8, %8 : vector<8x1xf32>
    %15 = arith.subf %13, %14 : vector<8x1xf32>
    %cst_10 = arith.constant 0.000000e+00 : f32
    %16 = vector.broadcast %cst_10 : f32 to vector<8x1xf32>
    %17 = arith.maximumf %15, %16 : vector<8x1xf32>
    %cst_11 = arith.constant 9.99999974E-6 : f32
    %18 = vector.broadcast %cst_11 : f32 to vector<8x1xf32>
    %19 = arith.addf %17, %18 : vector<8x1xf32>
    %20 = math.rsqrt %19 : vector<8x1xf32>
    %21 = arith.mulf %3, %20 : vector<8x1xf32>
    %22 = arith.mulf %8, %21 : vector<8x1xf32>
    %23 = arith.subf %4, %22 : vector<8x1xf32>
    %24 = vector.broadcast %21 : vector<8x1xf32> to vector<8x512xf32>
    %25 = arith.mulf %2, %24 : vector<8x512xf32>
    %26 = vector.broadcast %23 : vector<8x1xf32> to vector<8x512xf32>
    %27 = arith.addf %25, %26 : vector<8x512xf32>
    %28 = arith.truncf %27 : vector<8x512xf32> to vector<8x512xbf16>
    %c0_12 = arith.constant 0 : index
    %c0_13 = arith.constant 0 : index
    %29 = vector.load %arg4[%c0_12, %c0_13] : memref<8x512xbf16, #tpu.memory_space<vmem>>, vector<8x512xbf16>
    tpu.vector_store %arg4[%c0_12, %c0_13], %28 {strides = array<i32>} : memref<8x512xbf16, #tpu.memory_space<vmem>>, vector<8x512xbf16>,
    return
  }
  func.func @transform_0(%arg0: i32) -> (i32, i32) {
    %c0_i32 = arith.constant 0 : i32
    %c0_i32_0 = arith.constant 0 : i32
    %c0_i32_1 = arith.constant 0 : i32
    return %c0_i32, %c0_i32_0 : i32, i32
  }
  func.func @transform_1(%arg0: i32) -> (i32, i32) {
    %c0_i32 = arith.constant 0 : i32
    %c0_i32_0 = arith.constant 0 : i32
    %c0_i32_1 = arith.constant 0 : i32
    return %c0_i32, %c0_i32_0 : i32, i32
  }
  func.func @transform_2(%arg0: i32) -> (i32, i32) {
    %c0_i32 = arith.constant 0 : i32
    %c0_i32_0 = arith.constant 0 : i32
    %c0_i32_1 = arith.constant 0 : i32
    return %c0_i32, %c0_i32_0 : i32, i32
  }
  func.func @transform_3(%arg0: i32) -> (i32, i32) {
    %c0_i32 = arith.constant 0 : i32
    %c0_i32_0 = arith.constant 0 : i32
    %c0_i32_1 = arith.constant 0 : i32
    return %c0_i32, %c0_i32_0 : i32, i32
  }
}

module attributes {stable_mosaic.version = 11 : i64} {
  func.func @_conv_bn_kernel(%arg0: i32, %arg1: memref<72x2048xbf16, #tpu.memory_space<vmem>>, %arg2: memref<8x72xbf16, #tpu.memory_space<vmem>>, %arg3: memref<8x2xf32, #tpu.memory_space<vmem>>, %arg4: memref<8x2048xf32, #tpu.memory_space<vmem>>) attributes {dimension_semantics = [#tpu.dimension_semantics<arbitrary>], iteration_bounds = array<i64: 1>, scalar_prefetch = 0 : i64, scratch_operands = 0 : i64, tpu.core_type = #tpu.core_type<tc>, window_params = [{pipeline_mode = #tpu.pipeline_mode<synchronous>, transform_indices = @transform_0, window_bounds = array<i64: 72, 2048>}, {pipeline_mode = #tpu.pipeline_mode<synchronous>, transform_indices = @transform_1, window_bounds = array<i64: 8, 72>}, {pipeline_mode = #tpu.pipeline_mode<synchronous>, transform_indices = @transform_2, window_bounds = array<i64: 8, 2>}, {pipeline_mode = #tpu.pipeline_mode<synchronous>, transform_indices = @transform_3, window_bounds = array<i64: 8, 2048>}]} {
    %c0 = arith.constant 0 : index
    %c0_0 = arith.constant 0 : index
    %0 = vector.load %arg2[%c0, %c0_0] : memref<8x72xbf16, #tpu.memory_space<vmem>>, vector<8x72xbf16>
    %c0_1 = arith.constant 0 : index
    %c0_2 = arith.constant 0 : index
    %1 = vector.load %arg1[%c0_1, %c0_2] : memref<72x2048xbf16, #tpu.memory_space<vmem>>, vector<72x2048xbf16>
    %cst = arith.constant dense<0.000000e+00> : vector<8x2048xf32>
    %2 = tpu.matmul %0, %1, %cst {dimension_numbers = #tpu.dot_dimension_numbers<[1], [0], [0], [1], [0, 0, 1, 1], [], []>} : vector<8x72xbf16>, vector<72x2048xbf16>, vector<8x2048xf32> -> vector<8x2048xf32>
    %c0_3 = arith.constant 0 : index
    %c0_4 = arith.constant 0 : index
    %3 = vector.load %arg3[%c0_3, %c0_4] : memref<8x2xf32, #tpu.memory_space<vmem>>, vector<8x1xf32>
    %c0_5 = arith.constant 0 : index
    %c1 = arith.constant 1 : index
    %4 = vector.load %arg3[%c0_5, %c1] : memref<8x2xf32, #tpu.memory_space<vmem>>, vector<8x1xf32>
    %cst_6 = arith.constant dense<0.000000e+00> : vector<8xf32>
    %5 = vector.multi_reduction <add>, %2, %cst_6 [1] : vector<8x2048xf32> to vector<8xf32>
    %6 = vector.shape_cast %5 : vector<8xf32> to vector<8x1xf32>
    %cst_7 = arith.constant 4.8828125E-4 : f32
    %7 = vector.broadcast %cst_7 : f32 to vector<8x1xf32>
    %8 = arith.mulf %6, %7 : vector<8x1xf32>
    %9 = arith.mulf %2, %2 : vector<8x2048xf32>
    %cst_8 = arith.constant dense<0.000000e+00> : vector<8xf32>
    %10 = vector.multi_reduction <add>, %9, %cst_8 [1] : vector<8x2048xf32> to vector<8xf32>
    %11 = vector.shape_cast %10 : vector<8xf32> to vector<8x1xf32>
    %cst_9 = arith.constant 4.8828125E-4 : f32
    %12 = vector.broadcast %cst_9 : f32 to vector<8x1xf32>
    %13 = arith.mulf %11, %12 : vector<8x1xf32>
    %14 = arith.mulf %8, %8 : vector<8x1xf32>
    %15 = arith.subf %13, %14 : vector<8x1xf32>
    %cst_10 = arith.constant 0.000000e+00 : f32
    %16 = vector.broadcast %cst_10 : f32 to vector<8x1xf32>
    %17 = arith.maximumf %15, %16 : vector<8x1xf32>
    %cst_11 = arith.constant 9.99999974E-6 : f32
    %18 = vector.broadcast %cst_11 : f32 to vector<8x1xf32>
    %19 = arith.addf %17, %18 : vector<8x1xf32>
    %20 = math.rsqrt %19 : vector<8x1xf32>
    %21 = arith.mulf %3, %20 : vector<8x1xf32>
    %22 = arith.mulf %8, %21 : vector<8x1xf32>
    %23 = arith.subf %4, %22 : vector<8x1xf32>
    %24 = vector.broadcast %21 : vector<8x1xf32> to vector<8x2048xf32>
    %25 = arith.mulf %2, %24 : vector<8x2048xf32>
    %26 = vector.broadcast %23 : vector<8x1xf32> to vector<8x2048xf32>
    %27 = arith.addf %25, %26 : vector<8x2048xf32>
    %c0_12 = arith.constant 0 : index
    %c0_13 = arith.constant 0 : index
    %28 = vector.load %arg4[%c0_12, %c0_13] : memref<8x2048xf32, #tpu.memory_space<vmem>>, vector<8x2048xf32>
    tpu.vector_store %arg4[%c0_12, %c0_13], %27 {strides = array<i32>} : memref<8x2048xf32, #tpu.memory_space<vmem>>, vector<8x2048xf32>,
    return
  }
  func.func @transform_0(%arg0: i32) -> (i32, i32) {
    %c0_i32 = arith.constant 0 : i32
    %c0_i32_0 = arith.constant 0 : i32
    %c0_i32_1 = arith.constant 0 : i32
    return %c0_i32, %c0_i32_0 : i32, i32
  }
  func.func @transform_1(%arg0: i32) -> (i32, i32) {
    %c0_i32 = arith.constant 0 : i32
    %c0_i32_0 = arith.constant 0 : i32
    %c0_i32_1 = arith.constant 0 : i32
    return %c0_i32, %c0_i32_0 : i32, i32
  }
  func.func @transform_2(%arg0: i32) -> (i32, i32) {
    %c0_i32 = arith.constant 0 : i32
    %c0_i32_0 = arith.constant 0 : i32
    %c0_i32_1 = arith.constant 0 : i32
    return %c0_i32, %c0_i32_0 : i32, i32
  }
  func.func @transform_3(%arg0: i32) -> (i32, i32) {
    %c0_i32 = arith.constant 0 : i32
    %c0_i32_0 = arith.constant 0 : i32
    %c0_i32_1 = arith.constant 0 : i32
    return %c0_i32, %c0_i32_0 : i32, i32
  }
}

</mosaic_0001>

<bundles_post_ra>
// kernel: usrm5_2_forward.5
= control target key start
LH: loop header
LB: loop body
LE: loop exit
PB: predicated region body
PF: predicated region fallthrough
CT: control target
= control target key end

     0   :  { %v366_v1 = vmov 0   ;;  %vm131_vm0 = vcmask 1043456   ;;  %vm127_vm1 = vcmask 588800   ;;  %v367_v52 = vmov 1   ;;  %s368_s27 = smov 1   ;;  %s472_s0 = inlined_call_operand.vmem [shape: bf16[72,512], index: 0, kind: input, shape index: {}]   ;;  %s473_s1 = inlined_call_operand.vmem [shape: bf16[8,72], index: 1, kind: input, shape index: {}]   ;;  %s474_s2 = inlined_call_operand.vmem [shape: f32[8,2], index: 2, kind: input, shape index: {}]   ;;  %s475_s3 = inlined_call_operand.vmem [shape: f32[8,512], index: 3, kind: input, shape index: {}]   ;;  %s476_s4 = inlined_call_operand.vmem [shape: bf16[8,512], index: 4, kind: output, shape index: {}]  }
   0x1   :  { %v336_v0 = vld [vmem:[%s472_s0 + $0x4] ss:$16 sps:$4 sm:$0xff]   ;;  %176 = vmatprep.mubr.bf16.mxu0 %v366_v1  ;;  %217 = vmatprep.mubr.bf16.mxu1 %v366_v1  ;;  %v338_v2 = vld [vmem:[%s472_s0 + $0xc] ss:$16 sps:$4 sm:$0xff]   ;;  %v340_v3 = vld [vmem:[%s472_s0] ss:$16 sps:$4 sm:$0xff]  }
   0x2   :  { %334 = vset.pattern.permute.xlu1 %v366_v1  ;;  %144 = vmatprep.subr.bf16.mxu0 %v336_v0  ;;  %v341_v4 = vld [vmem:[%s472_s0 + $0x8] ss:$16 sps:$4 sm:$0xff]   ;;  %v342_v5 = vld [vmem:[%s472_s0 + $0x24] ss:$16 sps:$4 sm:$0xff]   ;;  %v344_v6 = vld [vmem:[%s472_s0 + $0x2c] ss:$16 sps:$4 sm:$0xff]  }
   0x3   :  { %185 = vmatprep.subr.bf16.mxu1 %v338_v2  ;;  %145 = vmatpush1.bf16.msra.mxu0 %v340_v3  ;;  %v346_v7 = vld [vmem:[%s472_s0 + $0x20] ss:$16 sps:$4 sm:$0xff]   ;;  %v347_v8 = vld [vmem:[%s472_s0 + $0x28] ss:$16 sps:$4 sm:$0xff]   ;;  %v348_v9 = vld [vmem:[%s472_s0 + $0x44] ss:$16 sps:$4 sm:$0xff]  }
   0x4   :  { %186 = vmatpush1.bf16.msra.mxu1 %v341_v4  ;;  %146 = vmatprep.subr.bf16.mxu0 %v342_v5  ;;  %v350_v10 = vld [vmem:[%s472_s0 + $0x4c] ss:$16 sps:$4 sm:$0xff]   ;;  %v352_v11 = vld [vmem:[%s472_s0 + $0x40] ss:$16 sps:$4 sm:$0xff]   ;;  %v353_v12 = vld [vmem:[%s472_s0 + $0x48] ss:$16 sps:$4 sm:$0xff]  }
   0x5   :  { %187 = vmatprep.subr.bf16.mxu1 %v344_v6  ;;  %v354_v13 = vld [vmem:[%s472_s0 + $0x64] ss:$16 sps:$4 sm:$0xff]   ;;  %v356_v14 = vld [vmem:[%s472_s0 + $0x6c] ss:$16 sps:$4 sm:$0xff]   ;;  %v358_v17 = vld [vmem:[%s472_s0 + $0x60] ss:$16 sps:$4 sm:$0xff]   ;;  %335 = vset.pattern.permute.xlu0 %v367_v52 }
   0x6   :  { %v35_v15 = vld [vmem:[%s472_s0 + $0x80] sm:$0xff]  ;;  %v36_v16 = vld [vmem:[%s472_s0 + $0x88] sm:$0xff]  ;;  %v275_v2 = vld [vmem:[%s475_s3 + $0x10] sm:$0xff] }
   0x7   :  { %147 = vmatpush1.bf16.msra.mxu0 %v346_v7  ;;  %v359_v18 = vld [vmem:[%s472_s0 + $0x68] ss:$16 sps:$4 sm:$0xff]   ;;  %v320_v19 = vcombine.high %v35_v15, %v35_v15  ;;  %v322_v20 = vcombine.high %v36_v16, %v36_v16  ;;  %v319_v21 = vcombine.low %v35_v15, %v35_v15  ;;  %v321_v22 = vcombine.low %v36_v16, %v36_v16  ;;  %v18_v25 = vld [vmem:[%s473_s1] sm:$0xf] }
   0x8   :  { %188 = vmatpush1.bf16.msra.mxu1 %v347_v8  ;;  %148 = vmatprep.subr.bf16.mxu0 %v348_v9  ;;  %v226_v53 = vld [vmem:[%s474_s2] sm:$0xff]  ;;  %v274_v1 = vld [vmem:[%s475_s3 + $0x8] sm:$0xff]  ;;  %v276_v3 = vld [vmem:[%s475_s3 + $0x18] sm:$0xff] }
   0x9   :  { %189 = vmatprep.subr.bf16.mxu1 %v350_v10  ;;  %v133_v23 = vsel %vm131_vm0, %v319_v21, 0  ;;  %v139_v24 = vsel %vm131_vm0, %v321_v22, 0  ;;  %v273_v0 = vld [vmem:[%s475_s3] sm:$0xff] }
   0xb   :  { %149 = vmatpush1.bf16.msra.mxu0 %v352_v11 }
   0xc   :  { %190 = vmatpush1.bf16.msra.mxu1 %v353_v12  ;;  %150 = vmatprep.subr.bf16.mxu0 %v354_v13 }
   0xd   :  { %191 = vmatprep.subr.bf16.mxu1 %v356_v14 }
   0xf   :  { %151 = vmatpush1.bf16.msra.mxu0 %v358_v17 }
  0x10   :  { %192 = vmatpush1.bf16.msra.mxu1 %v359_v18  ;;  %323 = vmatprep.subr.msk.bf16.mxu0 %vm131_vm0, %v320_v19 }
  0x11   :  { %325 = vmatprep.subr.msk.bf16.mxu1 %vm131_vm0, %v322_v20 }
  0x13   :  { %153 = vmatpush1.bf16.msra.mxu0 %v133_v23 }
  0x14   :  { %194 = vmatpush1.bf16.msra.mxu1 %v139_v24 }
  0x16   :  { %324 = vmatmul.mubr.msk.bf16.vlgmr.msra.gmra.mrb[0].mxu0 %vm127_vm1, %v18_v25 }
  0x17   :  { %326 = vmatmul.mubr.msk.bf16.vlgmr.msra.gmra.mrb[0].mxu1 %vm127_vm1, %v18_v25 }
  0xe9   :  { %v178_v26 = vpop.f32.mrb[0].mxu0 }
  0xea   :  { %v219_v27 = vpop.f32.mrb[0].mxu1  ;;  %v233_v28 = vmul.f32 %v178_v26, %v178_v26  ;;  %v180_v29 = vpop.f32.mrb[1].mxu0 }
  0xeb   :  { %v221_v30 = vpop.f32.mrb[1].mxu1  ;;  %v235_v31 = vmul.f32 %v219_v27, %v219_v27  ;;  %v227_v32 = vadd.f32 %v180_v29, %v178_v26  ;;  %v234_v33 = vmul.f32 %v180_v29, %v180_v29  ;;  %v182_v34 = vpop.f32.mrb[2].mxu0 }
  0xec   :  { %v223_v35 = vpop.f32.mrb[2].mxu1  ;;  %v183_v36 = vpop.f32.mrb[3].mxu0  ;;  %v236_v41 = vmul.f32 %v221_v30, %v221_v30 }
  0xed   :  { %v224_v37 = vpop.f32.mrb[3].mxu1  ;;  %v228_v38 = vadd.f32 %v227_v32, %v219_v27  ;;  %v237_v39 = vadd.f32 %v234_v33, %v233_v28 }
  0xef   :  { %v229_v40 = vadd.f32 %v228_v38, %v221_v30  ;;  %v238_v42 = vadd.f32 %v237_v39, %v235_v31 }
  0xf1   :  { %230 = vadd.xlane.f32.xlu0 %v229_v40  ;;  %v239_v43 = vadd.f32 %v238_v42, %v236_v41 }
  0xf5   :  { %240 = vadd.xlane.f32.xlu0 %v239_v43 }
 0x17e   :  { %v231_v44 = vpop.xlane.xlu0 %230 }
 0x17f   :  { %v232_v45 = vmul.f32 0.001953125, %v231_v44 }
 0x181   :  { %v243_v47 = vmul.f32 %v232_v45, %v232_v45 }
 0x182   :  { %v241_v46 = vpop.xlane.xlu0 %240 }
 0x183   :  { %v242_v48 = vmul.f32 0.001953125, %v241_v46 }
 0x185   :  { %v244_v49 = vsub.f32 %v242_v48, %v243_v47 }
 0x187   :  { %v245_v50 = vmax.f32 %v244_v49, 0.0 }
 0x189   :  { %v246_v51 = vadd.f32 1e-05, %v245_v50 }
 0x18b   :  { %364 = vrsqrt.f32 %v246_v51 }
 0x195   :  { %v365_v54 = vpop.eup %364 }
 0x196   :  { %v248_v55 = vmul.f32 %v365_v54, %v226_v53 }
 0x198   :  { %v249_v56 = vmul.f32 %v248_v55, %v232_v45 }
 0x19a   :  { %251 = vrot.lane.b32.xlu1 %v249_v56, %s368_s27 }
 0x19e   :  { %257 = vperm.xlu1 %334, %v248_v55  }
 0x20c   :  { %v252_v57 = vpop.permute.xlu1 %251 }
 0x20d   :  { %v254_v58 = vsub.f32 %v226_v53, %v252_v57 }
 0x20f   :  { %266 = vperm.xlu0 %335, %v254_v58  }
 0x21d   :  { %v258_v59 = vpop.permute.xlu1 %257 }
 0x21e   :  { %v260_v60 = vmul.f32 %v258_v59, %v178_v26  ;;  %v261_v61 = vmul.f32 %v258_v59, %v180_v29  ;;  %v262_v62 = vmul.f32 %v258_v59, %v219_v27  ;;  %v263_v63 = vmul.f32 %v258_v59, %v221_v30 }
 0x28e   :  { %v267_v4 = vpop.permute.xlu0 %266 }
 0x28f   :  { %v269_v5 = vadd.f32 %v267_v4, %v260_v60  ;;  %v270_v6 = vadd.f32 %v267_v4, %v261_v61  ;;  %v271_v7 = vadd.f32 %v267_v4, %v262_v62  ;;  %v272_v8 = vadd.f32 %v267_v4, %v263_v63 }
 0x291   :  { %v277_v9 = vadd.f32 %v273_v0, %v269_v5  ;;  %v278_v10 = vadd.f32 %v274_v1, %v270_v6  ;;  %v279_v11 = vadd.f32 %v275_v2, %v271_v7  ;;  %v280_v12 = vadd.f32 %v276_v3, %v272_v8 }
 0x293   :  { %v329_v13 = vpack.c.bf16 %v278_v10, %v277_v9  ;;  %v330_v14 = vpack.c.bf16 %v280_v12, %v279_v11 }
 0x295   :  { %297 = vst [vmem:[%s476_s4] sm:$0xff] %v329_v13  ;;  %298 = vst [vmem:[%s476_s4 + $0x8] sm:$0xff] %v330_v14 }

// kernel: usrm5_2_forward.6
= control target key start
LH: loop header
LB: loop body
LE: loop exit
PB: predicated region body
PF: predicated region fallthrough
CT: control target
= control target key end

     0   :  { %v178_v0 = vmov 0.0   ;;  %vm179_vm0 = vmmov 0   ;;  %vm56_vm1 = vcmask 1043456   ;;  %vm52_vm2 = vcmask 588800   ;;  %s182_s24 = smov 1   ;;  %s227_s0 = inlined_call_operand.vmem [shape: bf16[72,128], index: 0, kind: input, shape index: {}]   ;;  %s228_s1 = inlined_call_operand.vmem [shape: bf16[8,72], index: 1, kind: input, shape index: {}]   ;;  %s229_s2 = inlined_call_operand.vmem [shape: f32[8,2], index: 2, kind: input, shape index: {}]   ;;  %s230_s3 = inlined_call_operand.vmem [shape: bf16[8,128], index: 3, kind: output, shape index: {}]  }
   0x1   :  { %150 = vmatprep.subr.bf16.mxu0 %v178_v0  ;;  %v171_v1 = vld [vmem:[%s227_s0] sm:$0xff]   ;;  %160 = vmatprep.mubr.msk.bf16.mxu0 %vm179_vm0, %v178_v0  ;;  %v172_v2 = vld [vmem:[%s227_s0 + $0x8] sm:$0xff]   ;;  %v173_v3 = vld [vmem:[%s227_s0 + $0x10] sm:$0xff]   ;;  %v180_v13 = vmov 0   ;;  %v181_v22 = vmov 1  }
   0x2   :  { %151 = vmatpush3.bf16.msra.mxu0 %v171_v1  ;;  %v174_v4 = vld [vmem:[%s227_s0 + $0x18] sm:$0xff]   ;;  %v175_v5 = vld [vmem:[%s227_s0 + $0x20] ss:$0 sps:$4 sm:$0xff]   ;;  %169 = vset.pattern.permute.xlu1 %v180_v13 }
   0x3   :  { %152 = vmatprep.subr.bf16.mxu0 %v178_v0  ;;  %v58_v6 = vsel %vm56_vm1, %v175_v5, 0  ;;  %v15_v7 = vld [vmem:[%s228_s1] sm:$0xf]  ;;  %170 = vset.pattern.permute.xlu0 %v181_v22 }
   0x4   :  { %v100_v23 = vld [vmem:[%s229_s2] sm:$0xff] }
   0x6   :  { %153 = vmatpush3.bf16.msra.mxu0 %v172_v2 }
   0x7   :  { %154 = vmatprep.subr.bf16.mxu0 %v178_v0 }
   0xa   :  { %155 = vmatpush3.bf16.msra.mxu0 %v173_v3 }
   0xb   :  { %156 = vmatprep.subr.bf16.mxu0 %v178_v0 }
   0xe   :  { %157 = vmatpush3.bf16.msra.mxu0 %v174_v4 }
   0xf   :  { %158 = vmatprep.subr.bf16.mxu0 %v178_v0 }
  0x12   :  { %159 = vmatpush3.bf16.msra.mxu0 %v58_v6 }
  0x15   :  { %161 = vmatmul.mubr.msk.bf16.vlgmr.msra.gmra.mrb[0].mxu0 %vm52_vm2, %v15_v7 }
  0xe8   :  { %v94_v8 = vpop.f32.mrb[0].mxu0 }
  0xe9   :  { %101 = vadd.xlane.f32.xlu0 %v94_v8  ;;  %v162_v9 = vpop.f32.mrb[1].mxu0  ;;  %v104_v12 = vmul.f32 %v94_v8, %v94_v8 }
  0xea   :  { %v97_v10 = vpop.f32.mrb[2].mxu0 }
  0xeb   :  { %v163_v11 = vpop.f32.mrb[3].mxu0 }
  0xed   :  { %105 = vadd.xlane.f32.xlu0 %v104_v12 }
 0x176   :  { %v102_v14 = vpop.xlane.xlu0 %101 }
 0x177   :  { %v103_v15 = vmul.f32 0.0078125, %v102_v14 }
 0x179   :  { %v108_v17 = vmul.f32 %v103_v15, %v103_v15 }
 0x17a   :  { %v106_v16 = vpop.xlane.xlu0 %105 }
 0x17b   :  { %v107_v18 = vmul.f32 0.0078125, %v106_v16 }
 0x17d   :  { %v109_v19 = vsub.f32 %v107_v18, %v108_v17 }
 0x17f   :  { %v110_v20 = vmax.f32 %v109_v19, 0.0 }
 0x181   :  { %v111_v21 = vadd.f32 1e-05, %v110_v20 }
 0x183   :  { %176 = vrsqrt.f32 %v111_v21 }
 0x18d   :  { %v177_v24 = vpop.eup %176 }
 0x18e   :  { %v113_v25 = vmul.f32 %v177_v24, %v100_v23 }
 0x190   :  { %v114_v26 = vmul.f32 %v113_v25, %v103_v15 }
 0x192   :  { %116 = vrot.lane.b32.xlu1 %v114_v26, %s182_s24 }
 0x196   :  { %122 = vperm.xlu1 %169, %v113_v25  }
 0x204   :  { %v117_v27 = vpop.permute.xlu1 %116 }
 0x205   :  { %v119_v28 = vsub.f32 %v100_v23, %v117_v27 }
 0x207   :  { %128 = vperm.xlu0 %170, %v119_v28  }
 0x215   :  { %v123_v29 = vpop.permute.xlu1 %122 }
 0x216   :  { %v125_v30 = vmul.f32 %v123_v29, %v94_v8 }
 0x286   :  { %v129_v31 = vpop.permute.xlu0 %128 }
 0x287   :  { %v131_v32 = vadd.f32 %v129_v31, %v125_v30 }
 0x289   :  { %v132_v33 = vpack.c.bf16 %v131_v32, %v131_v32 }
 0x28b   :  { %133 = vst [vmem:[%s230_s3] sm:$0xf] %v132_v33 }

// kernel: usrm5_2_forward.8
= control target key start
LH: loop header
LB: loop body
LE: loop exit
PB: predicated region body
PF: predicated region fallthrough
CT: control target
= control target key end

     0   :  { %v355_v1 = vmov 0   ;;  %vm128_vm0 = vcmask 1043456   ;;  %vm124_vm1 = vcmask 588800   ;;  %v356_v52 = vmov 1   ;;  %s357_s23 = smov 1   ;;  %s444_s0 = inlined_call_operand.vmem [shape: bf16[72,512], index: 0, kind: input, shape index: {}]   ;;  %s445_s1 = inlined_call_operand.vmem [shape: bf16[8,72], index: 1, kind: input, shape index: {}]   ;;  %s446_s2 = inlined_call_operand.vmem [shape: f32[8,2], index: 2, kind: input, shape index: {}]   ;;  %s447_s3 = inlined_call_operand.vmem [shape: bf16[8,512], index: 3, kind: output, shape index: {}]  }
   0x1   :  { %v325_v0 = vld [vmem:[%s444_s0 + $0x4] ss:$16 sps:$4 sm:$0xff]   ;;  %173 = vmatprep.mubr.bf16.mxu0 %v355_v1  ;;  %214 = vmatprep.mubr.bf16.mxu1 %v355_v1  ;;  %v327_v2 = vld [vmem:[%s444_s0 + $0xc] ss:$16 sps:$4 sm:$0xff]   ;;  %v329_v3 = vld [vmem:[%s444_s0] ss:$16 sps:$4 sm:$0xff]  }
   0x2   :  { %323 = vset.pattern.permute.xlu1 %v355_v1  ;;  %141 = vmatprep.subr.bf16.mxu0 %v325_v0  ;;  %v330_v4 = vld [vmem:[%s444_s0 + $0x8] ss:$16 sps:$4 sm:$0xff]   ;;  %v331_v5 = vld [vmem:[%s444_s0 + $0x24] ss:$16 sps:$4 sm:$0xff]   ;;  %v333_v6 = vld [vmem:[%s444_s0 + $0x2c] ss:$16 sps:$4 sm:$0xff]  }
   0x3   :  { %182 = vmatprep.subr.bf16.mxu1 %v327_v2  ;;  %142 = vmatpush1.bf16.msra.mxu0 %v329_v3  ;;  %v335_v7 = vld [vmem:[%s444_s0 + $0x20] ss:$16 sps:$4 sm:$0xff]   ;;  %v336_v8 = vld [vmem:[%s444_s0 + $0x28] ss:$16 sps:$4 sm:$0xff]   ;;  %v337_v9 = vld [vmem:[%s444_s0 + $0x44] ss:$16 sps:$4 sm:$0xff]  }
   0x4   :  { %183 = vmatpush1.bf16.msra.mxu1 %v330_v4  ;;  %143 = vmatprep.subr.bf16.mxu0 %v331_v5  ;;  %v339_v10 = vld [vmem:[%s444_s0 + $0x4c] ss:$16 sps:$4 sm:$0xff]   ;;  %v341_v11 = vld [vmem:[%s444_s0 + $0x40] ss:$16 sps:$4 sm:$0xff]   ;;  %v342_v12 = vld [vmem:[%s444_s0 + $0x48] ss:$16 sps:$4 sm:$0xff]  }
   0x5   :  { %184 = vmatprep.subr.bf16.mxu1 %v333_v6  ;;  %v343_v13 = vld [vmem:[%s444_s0 + $0x64] ss:$16 sps:$4 sm:$0xff]   ;;  %v345_v14 = vld [vmem:[%s444_s0 + $0x6c] ss:$16 sps:$4 sm:$0xff]   ;;  %v347_v17 = vld [vmem:[%s444_s0 + $0x60] ss:$16 sps:$4 sm:$0xff]   ;;  %324 = vset.pattern.permute.xlu0 %v356_v52 }
   0x6   :  { %v32_v15 = vld [vmem:[%s444_s0 + $0x80] sm:$0xff]  ;;  %v33_v16 = vld [vmem:[%s444_s0 + $0x88] sm:$0xff] }
   0x7   :  { %144 = vmatpush1.bf16.msra.mxu0 %v335_v7  ;;  %v348_v18 = vld [vmem:[%s444_s0 + $0x68] ss:$16 sps:$4 sm:$0xff]   ;;  %v309_v19 = vcombine.high %v32_v15, %v32_v15  ;;  %v311_v20 = vcombine.high %v33_v16, %v33_v16  ;;  %v308_v21 = vcombine.low %v32_v15, %v32_v15  ;;  %v310_v22 = vcombine.low %v33_v16, %v33_v16  ;;  %v15_v25 = vld [vmem:[%s445_s1] sm:$0xf] }
   0x8   :  { %185 = vmatpush1.bf16.msra.mxu1 %v336_v8  ;;  %145 = vmatprep.subr.bf16.mxu0 %v337_v9  ;;  %v223_v53 = vld [vmem:[%s446_s2] sm:$0xff] }
   0x9   :  { %186 = vmatprep.subr.bf16.mxu1 %v339_v10  ;;  %v130_v23 = vsel %vm128_vm0, %v308_v21, 0  ;;  %v136_v24 = vsel %vm128_vm0, %v310_v22, 0 }
   0xb   :  { %146 = vmatpush1.bf16.msra.mxu0 %v341_v11 }
   0xc   :  { %187 = vmatpush1.bf16.msra.mxu1 %v342_v12  ;;  %147 = vmatprep.subr.bf16.mxu0 %v343_v13 }
   0xd   :  { %188 = vmatprep.subr.bf16.mxu1 %v345_v14 }
   0xf   :  { %148 = vmatpush1.bf16.msra.mxu0 %v347_v17 }
  0x10   :  { %189 = vmatpush1.bf16.msra.mxu1 %v348_v18  ;;  %312 = vmatprep.subr.msk.bf16.mxu0 %vm128_vm0, %v309_v19 }
  0x11   :  { %314 = vmatprep.subr.msk.bf16.mxu1 %vm128_vm0, %v311_v20 }
  0x13   :  { %150 = vmatpush1.bf16.msra.mxu0 %v130_v23 }
  0x14   :  { %191 = vmatpush1.bf16.msra.mxu1 %v136_v24 }
  0x16   :  { %313 = vmatmul.mubr.msk.bf16.vlgmr.msra.gmra.mrb[0].mxu0 %vm124_vm1, %v15_v25 }
  0x17   :  { %315 = vmatmul.mubr.msk.bf16.vlgmr.msra.gmra.mrb[0].mxu1 %vm124_vm1, %v15_v25 }
  0xe9   :  { %v175_v26 = vpop.f32.mrb[0].mxu0 }
  0xea   :  { %v216_v27 = vpop.f32.mrb[0].mxu1  ;;  %v230_v28 = vmul.f32 %v175_v26, %v175_v26  ;;  %v177_v29 = vpop.f32.mrb[1].mxu0 }
  0xeb   :  { %v218_v30 = vpop.f32.mrb[1].mxu1  ;;  %v232_v31 = vmul.f32 %v216_v27, %v216_v27  ;;  %v224_v32 = vadd.f32 %v177_v29, %v175_v26  ;;  %v231_v33 = vmul.f32 %v177_v29, %v177_v29  ;;  %v179_v34 = vpop.f32.mrb[2].mxu0 }
  0xec   :  { %v220_v35 = vpop.f32.mrb[2].mxu1  ;;  %v180_v36 = vpop.f32.mrb[3].mxu0  ;;  %v233_v41 = vmul.f32 %v218_v30, %v218_v30 }
  0xed   :  { %v221_v37 = vpop.f32.mrb[3].mxu1  ;;  %v225_v38 = vadd.f32 %v224_v32, %v216_v27  ;;  %v234_v39 = vadd.f32 %v231_v33, %v230_v28 }
  0xef   :  { %v226_v40 = vadd.f32 %v225_v38, %v218_v30  ;;  %v235_v42 = vadd.f32 %v234_v39, %v232_v31 }
  0xf1   :  { %227 = vadd.xlane.f32.xlu0 %v226_v40  ;;  %v236_v43 = vadd.f32 %v235_v42, %v233_v41 }
  0xf5   :  { %237 = vadd.xlane.f32.xlu0 %v236_v43 }
 0x17e   :  { %v228_v44 = vpop.xlane.xlu0 %227 }
 0x17f   :  { %v229_v45 = vmul.f32 0.001953125, %v228_v44 }
 0x181   :  { %v240_v47 = vmul.f32 %v229_v45, %v229_v45 }
 0x182   :  { %v238_v46 = vpop.xlane.xlu0 %237 }
 0x183   :  { %v239_v48 = vmul.f32 0.001953125, %v238_v46 }
 0x185   :  { %v241_v49 = vsub.f32 %v239_v48, %v240_v47 }
 0x187   :  { %v242_v50 = vmax.f32 %v241_v49, 0.0 }
 0x189   :  { %v243_v51 = vadd.f32 1e-05, %v242_v50 }
 0x18b   :  { %353 = vrsqrt.f32 %v243_v51 }
 0x195   :  { %v354_v54 = vpop.eup %353 }
 0x196   :  { %v245_v55 = vmul.f32 %v354_v54, %v223_v53 }
 0x198   :  { %v246_v56 = vmul.f32 %v245_v55, %v229_v45 }
 0x19a   :  { %248 = vrot.lane.b32.xlu1 %v246_v56, %s357_s23 }
 0x19e   :  { %254 = vperm.xlu1 %323, %v245_v55  }
 0x20c   :  { %v249_v57 = vpop.permute.xlu1 %248 }
 0x20d   :  { %v251_v58 = vsub.f32 %v223_v53, %v249_v57 }
 0x20f   :  { %263 = vperm.xlu0 %324, %v251_v58  }
 0x21d   :  { %v255_v59 = vpop.permute.xlu1 %254 }
 0x21e   :  { %v257_v60 = vmul.f32 %v255_v59, %v175_v26  ;;  %v258_v61 = vmul.f32 %v255_v59, %v177_v29  ;;  %v259_v62 = vmul.f32 %v255_v59, %v216_v27  ;;  %v260_v63 = vmul.f32 %v255_v59, %v218_v30 }
 0x28e   :  { %v264_v0 = vpop.permute.xlu0 %263 }
 0x28f   :  { %v266_v1 = vadd.f32 %v264_v0, %v257_v60  ;;  %v267_v2 = vadd.f32 %v264_v0, %v258_v61  ;;  %v268_v3 = vadd.f32 %v264_v0, %v259_v62  ;;  %v269_v4 = vadd.f32 %v264_v0, %v260_v63 }
 0x291   :  { %v318_v5 = vpack.c.bf16 %v267_v2, %v266_v1  ;;  %v319_v6 = vpack.c.bf16 %v269_v4, %v268_v3 }
 0x293   :  { %286 = vst [vmem:[%s447_s3] sm:$0xff] %v318_v5  ;;  %287 = vst [vmem:[%s447_s3 + $0x8] sm:$0xff] %v319_v6 }

// kernel: usrm5_2_forward.9
= control target key start
LH: loop header
LB: loop body
LE: loop exit
PB: predicated region body
PF: predicated region fallthrough
CT: control target
= control target key end

     0   :  { %v1075_v3 = vmov 0   ;;  %vm452_vm0 = vcmask 1043456   ;;  %vm448_vm1 = vcmask 588800   ;;  %s1077_s20 = smov 1   ;;  %s1483_s0 = inlined_call_operand.vmem [shape: bf16[72,2048], index: 0, kind: input, shape index: {}]   ;;  %s1484_s1 = inlined_call_operand.vmem [shape: bf16[8,72], index: 1, kind: input, shape index: {}]   ;;  %s1485_s2 = inlined_call_operand.vmem [shape: f32[8,2], index: 2, kind: input, shape index: {}]   ;;  %s1486_s3 = inlined_call_operand.vmem [shape: f32[8,2048], index: 3, kind: output, shape index: {}]  }
   0x1   :  { %v16_v0 = vld [vmem:[%s1483_s0] sm:$0xff]  ;;  %v17_v2 = vld [vmem:[%s1483_s0 + $0x8] sm:$0xff]  ;;  %533 = vmatprep.mubr.bf16.mxu0 %v1075_v3  ;;  %574 = vmatprep.mubr.bf16.mxu1 %v1075_v3  ;;  %v18_v39 = vld [vmem:[%s1483_s0 + $0x10] sm:$0xff] }
   0x2   :  { %v24_v1 = vld [vmem:[%s1483_s0 + $0x40] sm:$0xff]  ;;  %v25_v6 = vld [vmem:[%s1483_s0 + $0x48] sm:$0xff]  ;;  %1055 = vset.pattern.permute.xlu1 %v1075_v3  ;;  %v26_v40 = vld [vmem:[%s1483_s0 + $0x50] sm:$0xff] }
   0x3   :  { %v957_v4 = vcombine.high %v16_v0, %v24_v1  ;;  %v956_v5 = vcombine.low %v16_v0, %v24_v1  ;;  %v32_v7 = vld [vmem:[%s1483_s0 + $0x80] sm:$0xff]  ;;  %v959_v9 = vcombine.high %v17_v2, %v25_v6  ;;  %v958_v10 = vcombine.low %v17_v2, %v25_v6  ;;  %v33_v12 = vld [vmem:[%s1483_s0 + $0x88] sm:$0xff]  ;;  %v19_v41 = vld [vmem:[%s1483_s0 + $0x18] sm:$0xff] }
   0x4   :  { %v40_v8 = vld [vmem:[%s1483_s0 + $0xc0] sm:$0xff]  ;;  %v41_v13 = vld [vmem:[%s1483_s0 + $0xc8] sm:$0xff]  ;;  %v27_v42 = vld [vmem:[%s1483_s0 + $0x58] sm:$0xff]  ;;  %v961_v44 = vcombine.high %v18_v39, %v26_v40  ;;  %v960_v52 = vcombine.low %v18_v39, %v26_v40 }
   0x5   :  { %v973_v11 = vcombine.high %v32_v7, %v40_v8  ;;  %v48_v14 = vld [vmem:[%s1483_s0 + $0x100] sm:$0xff]  ;;  %501 = vmatprep.subr.bf16.mxu0 %v957_v4  ;;  %v975_v15 = vcombine.high %v33_v12, %v41_v13  ;;  %v49_v17 = vld [vmem:[%s1483_s0 + $0x108] sm:$0xff]  ;;  %542 = vmatprep.subr.bf16.mxu1 %v959_v9  ;;  %v972_v19 = vcombine.low %v32_v7, %v40_v8  ;;  %v34_v47 = vld [vmem:[%s1483_s0 + $0x90] sm:$0xff] }
   0x6   :  { %v56_v16 = vld [vmem:[%s1483_s0 + $0x140] sm:$0xff]  ;;  %v57_v18 = vld [vmem:[%s1483_s0 + $0x148] sm:$0xff]  ;;  %502 = vmatpush1.bf16.msra.mxu0 %v956_v5  ;;  %543 = vmatpush1.bf16.msra.mxu1 %v958_v10  ;;  %v974_v20 = vcombine.low %v33_v12, %v41_v13  ;;  %v963_v46 = vcombine.high %v19_v41, %v27_v42  ;;  %v42_v48 = vld [vmem:[%s1483_s0 + $0xd0] sm:$0xff]  ;;  %v962_v53 = vcombine.low %v19_v41, %v27_v42 }
   0x7   :  { %503 = vmatprep.subr.bf16.mxu0 %v973_v11  ;;  %v989_v21 = vcombine.high %v48_v14, %v56_v16  ;;  %544 = vmatprep.subr.bf16.mxu1 %v975_v15  ;;  %v991_v22 = vcombine.high %v49_v17, %v57_v18  ;;  %v64_v23 = vld [vmem:[%s1483_s0 + $0x180] sm:$0xff]  ;;  %v65_v25 = vld [vmem:[%s1483_s0 + $0x188] sm:$0xff]  ;;  %v988_v27 = vcombine.low %v48_v14, %v56_v16  ;;  %v35_v49 = vld [vmem:[%s1483_s0 + $0x98] sm:$0xff] }
   0x8   :  { %v72_v24 = vld [vmem:[%s1483_s0 + $0x1c0] sm:$0xff]  ;;  %v73_v26 = vld [vmem:[%s1483_s0 + $0x1c8] sm:$0xff]  ;;  %v990_v28 = vcombine.low %v49_v17, %v57_v18  ;;  %v43_v50 = vld [vmem:[%s1483_s0 + $0xd8] sm:$0xff]  ;;  %v977_v54 = vcombine.high %v34_v47, %v42_v48  ;;  %v976_v60 = vcombine.low %v34_v47, %v42_v48 }
   0x9   :  { %v1005_v29 = vcombine.high %v64_v23, %v72_v24  ;;  %v1007_v30 = vcombine.high %v65_v25, %v73_v26  ;;  %v80_v31 = vld [vmem:[%s1483_s0 + $0x200] sm:$0xff]  ;;  %v81_v32 = vld [vmem:[%s1483_s0 + $0x208] sm:$0xff]  ;;  %v1004_v33 = vcombine.low %v64_v23, %v72_v24  ;;  %v1006_v34 = vcombine.low %v65_v25, %v73_v26  ;;  %v50_v56 = vld [vmem:[%s1483_s0 + $0x110] sm:$0xff] }
   0xa   :  { %504 = vmatpush1.bf16.msra.mxu0 %v972_v19  ;;  %545 = vmatpush1.bf16.msra.mxu1 %v974_v20  ;;  %v1021_v35 = vcombine.high %v80_v31, %v80_v31  ;;  %v1020_v36 = vcombine.low %v80_v31, %v80_v31  ;;  %v1023_v37 = vcombine.high %v81_v32, %v81_v32  ;;  %v1186_v51 = vld [vmem:[%s1484_s1] sm:$0xf]  ;;  %v58_v57 = vld [vmem:[%s1483_s0 + $0x150] sm:$0xff]  ;;  %v51_v58 = vld [vmem:[%s1483_s0 + $0x118] sm:$0xff] }
   0xb   :  { %505 = vmatprep.subr.bf16.mxu0 %v989_v21  ;;  %546 = vmatprep.subr.bf16.mxu1 %v991_v22  ;;  %v1022_v38 = vcombine.low %v81_v32, %v81_v32  ;;  %v979_v55 = vcombine.high %v35_v49, %v43_v50  ;;  %v59_v59 = vld [vmem:[%s1483_s0 + $0x158] sm:$0xff]  ;;  %v978_v61 = vcombine.low %v35_v49, %v43_v50  ;;  %v66_v0 = vld [vmem:[%s1483_s0 + $0x190] sm:$0xff]  ;;  %v20_v17 = vld [vmem:[%s1483_s0 + $0x20] sm:$0xff] }
   0xc   :  { %v454_v43 = vsel %vm452_vm0, %v1020_v36, 0  ;;  %v993_v62 = vcombine.high %v50_v56, %v58_v57  ;;  %v995_v63 = vcombine.high %v51_v58, %v59_v59  ;;  %v74_v1 = vld [vmem:[%s1483_s0 + $0x1d0] sm:$0xff]  ;;  %v67_v2 = vld [vmem:[%s1483_s0 + $0x198] sm:$0xff]  ;;  %v992_v5 = vcombine.low %v50_v56, %v58_v57  ;;  %v28_v18 = vld [vmem:[%s1483_s0 + $0x60] sm:$0xff] }
   0xd   :  { %v460_v45 = vsel %vm452_vm0, %v1022_v38, 0  ;;  %v75_v4 = vld [vmem:[%s1483_s0 + $0x1d8] sm:$0xff]  ;;  %v994_v6 = vcombine.low %v51_v58, %v59_v59  ;;  %v1009_v7 = vcombine.high %v66_v0, %v74_v1  ;;  %v82_v9 = vld [vmem:[%s1483_s0 + $0x210] sm:$0xff]  ;;  %v1008_v11 = vcombine.low %v66_v0, %v74_v1  ;;  %v21_v19 = vld [vmem:[%s1483_s0 + $0x28] sm:$0xff] }
   0xe   :  { %506 = vmatpush1.bf16.msra.mxu0 %v988_v27  ;;  %547 = vmatpush1.bf16.msra.mxu1 %v990_v28  ;;  %v1011_v8 = vcombine.high %v67_v2, %v75_v4  ;;  %v83_v10 = vld [vmem:[%s1483_s0 + $0x218] sm:$0xff]  ;;  %v1010_v12 = vcombine.low %v67_v2, %v75_v4  ;;  %v1025_v13 = vcombine.high %v82_v9, %v82_v9  ;;  %v29_v20 = vld [vmem:[%s1483_s0 + $0x68] sm:$0xff]  ;;  %v36_v25 = vld [vmem:[%s1483_s0 + $0xa0] sm:$0xff] }
   0xf   :  { %507 = vmatprep.subr.bf16.mxu0 %v1005_v29  ;;  %548 = vmatprep.subr.bf16.mxu1 %v1007_v30  ;;  %v1024_v14 = vcombine.low %v82_v9, %v82_v9  ;;  %v1027_v15 = vcombine.high %v83_v10, %v83_v10  ;;  %v1026_v16 = vcombine.low %v83_v10, %v83_v10  ;;  %v44_v26 = vld [vmem:[%s1483_s0 + $0xe0] sm:$0xff]  ;;  %v37_v27 = vld [vmem:[%s1483_s0 + $0xa8] sm:$0xff]  ;;  %v22_v58 = vld [vmem:[%s1483_s0 + $0x30] sm:$0xff] }
  0x10   :  { %v965_v22 = vcombine.high %v20_v17, %v28_v18  ;;  %v967_v24 = vcombine.high %v21_v19, %v29_v20  ;;  %v45_v28 = vld [vmem:[%s1483_s0 + $0xe8] sm:$0xff]  ;;  %v964_v29 = vcombine.low %v20_v17, %v28_v18  ;;  %v966_v30 = vcombine.low %v21_v19, %v29_v20  ;;  %v68_v41 = vld [vmem:[%s1483_s0 + $0x1a0] sm:$0xff]  ;;  %v30_v59 = vld [vmem:[%s1483_s0 + $0x70] sm:$0xff] }
  0x11   :  { %v466_v21 = vsel %vm452_vm0, %v1024_v14, 0  ;;  %v472_v23 = vsel %vm452_vm0, %v1026_v16, 0  ;;  %v981_v31 = vcombine.high %v36_v25, %v44_v26  ;;  %v983_v32 = vcombine.high %v37_v27, %v45_v28  ;;  %v61_v36 = vld [vmem:[%s1483_s0 + $0x168] sm:$0xff]  ;;  %v76_v42 = vld [vmem:[%s1483_s0 + $0x1e0] sm:$0xff]  ;;  %v38_v2 = vld [vmem:[%s1483_s0 + $0xb0] sm:$0xff] }
  0x12   :  { %508 = vmatpush1.bf16.msra.mxu0 %v1004_v33  ;;  %549 = vmatpush1.bf16.msra.mxu1 %v1006_v34  ;;  %v52_v33 = vld [vmem:[%s1483_s0 + $0x120] sm:$0xff]  ;;  %v982_v38 = vcombine.low %v37_v27, %v45_v28  ;;  %v1013_v47 = vcombine.high %v68_v41, %v76_v42  ;;  %v85_v50 = vld [vmem:[%s1483_s0 + $0x228] sm:$0xff]  ;;  %v46_v4 = vld [vmem:[%s1483_s0 + $0xf0] sm:$0xff] }
  0x13   :  { %1036 = vmatprep.subr.msk.bf16.mxu0 %vm452_vm0, %v1021_v35  ;;  %1038 = vmatprep.subr.msk.bf16.mxu1 %vm452_vm0, %v1023_v37  ;;  %v60_v34 = vld [vmem:[%s1483_s0 + $0x160] sm:$0xff]  ;;  %v53_v35 = vld [vmem:[%s1483_s0 + $0x128] sm:$0xff]  ;;  %v980_v37 = vcombine.low %v36_v25, %v44_v26  ;;  %v1031_v56 = vcombine.high %v85_v50, %v85_v50  ;;  %v1030_v57 = vcombine.low %v85_v50, %v85_v50  ;;  %v63_v14 = vld [vmem:[%s1483_s0 + $0x178] sm:$0xff] }
  0x14   :  { %v997_v39 = vcombine.high %v52_v33, %v60_v34  ;;  %v999_v40 = vcombine.high %v53_v35, %v61_v36  ;;  %v84_v49 = vld [vmem:[%s1483_s0 + $0x220] sm:$0xff]  ;;  %v985_v9 = vcombine.high %v38_v2, %v46_v4  ;;  %v70_v19 = vld [vmem:[%s1483_s0 + $0x1b0] sm:$0xff]  ;;  %v87_v28 = vld [vmem:[%s1483_s0 + $0x238] sm:$0xff] }
  0x15   :  { %v484_v0 = vsel %vm452_vm0, %v1030_v57, 0  ;;  %v78_v20 = vld [vmem:[%s1483_s0 + $0x1f0] sm:$0xff] }
  0x16   :  { %510 = vmatpush1.bf16.msra.mxu0 %v454_v43  ;;  %551 = vmatpush1.bf16.msra.mxu1 %v460_v45  ;;  %v69_v43 = vld [vmem:[%s1483_s0 + $0x1a8] sm:$0xff]  ;;  %v996_v45 = vcombine.low %v52_v33, %v60_v34  ;;  %v1017_v25 = vcombine.high %v70_v19, %v78_v20  ;;  %v86_v27 = vld [vmem:[%s1483_s0 + $0x230] sm:$0xff]  ;;  %v1034_v33 = vcombine.low %v87_v28, %v87_v28 }
  0x17   :  { %583 = vmatprep.subr.bf16.mxu0 %v961_v44  ;;  %624 = vmatprep.subr.bf16.mxu1 %v963_v46  ;;  %v77_v44 = vld [vmem:[%s1483_s0 + $0x1e8] sm:$0xff]  ;;  %v998_v46 = vcombine.low %v53_v35, %v61_v36 }
  0x18   :  { %v1015_v48 = vcombine.high %v69_v43, %v77_v44  ;;  %v496_v35 = vsel %vm452_vm0, %v1034_v33, 0 }
  0x19   :  { %1037 = vmatmul.mubr.msk.bf16.vlgmr.msra.gmra.mrb[0].mxu0 %vm448_vm1, %v1186_v51  ;;  %1039 = vmatmul.mubr.msk.bf16.vlgmr.msra.gmra.mrb[0].mxu1 %vm448_vm1, %v1186_v51 }
  0x1a   :  { %584 = vmatpush1.bf16.msra.mxu0 %v960_v52  ;;  %625 = vmatpush1.bf16.msra.mxu1 %v962_v53  ;;  %v1012_v52 = vcombine.low %v68_v41, %v76_v42  ;;  %v1014_v53 = vcombine.low %v69_v43, %v77_v44 }
  0x1b   :  { %585 = vmatprep.subr.bf16.mxu0 %v977_v54  ;;  %626 = vmatprep.subr.bf16.mxu1 %v979_v55  ;;  %v1029_v54 = vcombine.high %v84_v49, %v84_v49  ;;  %v1028_v55 = vcombine.low %v84_v49, %v84_v49 }
  0x1c   :  { %615 = vmatprep.mubr.bf16.mxu0 %v1075_v3  ;;  %656 = vmatprep.mubr.bf16.mxu1 %v1075_v3 }
  0x1e   :  { %586 = vmatpush1.bf16.msra.mxu0 %v976_v60  ;;  %627 = vmatpush1.bf16.msra.mxu1 %v978_v61  ;;  %v23_v60 = vld [vmem:[%s1483_s0 + $0x38] sm:$0xff] }
  0x1f   :  { %587 = vmatprep.subr.bf16.mxu0 %v993_v62  ;;  %628 = vmatprep.subr.bf16.mxu1 %v995_v63  ;;  %v31_v61 = vld [vmem:[%s1483_s0 + $0x78] sm:$0xff]  ;;  %v478_v62 = vsel %vm452_vm0, %v1028_v55, 0  ;;  %v969_v63 = vcombine.high %v22_v58, %v30_v59 }
  0x20   :  { %v971_v1 = vcombine.high %v23_v60, %v31_v61 }
  0x22   :  { %588 = vmatpush1.bf16.msra.mxu0 %v992_v5  ;;  %629 = vmatpush1.bf16.msra.mxu1 %v994_v6  ;;  %v39_v5 = vld [vmem:[%s1483_s0 + $0xb8] sm:$0xff] }
  0x23   :  { %589 = vmatprep.subr.bf16.mxu0 %v1009_v7  ;;  %630 = vmatprep.subr.bf16.mxu1 %v1011_v8  ;;  %v47_v6 = vld [vmem:[%s1483_s0 + $0xf8] sm:$0xff]  ;;  %v968_v7 = vcombine.low %v22_v58, %v30_v59  ;;  %v970_v8 = vcombine.low %v23_v60, %v31_v61 }
  0x24   :  { %v987_v10 = vcombine.high %v39_v5, %v47_v6  ;;  %v986_v16 = vcombine.low %v39_v5, %v47_v6 }
  0x26   :  { %590 = vmatpush1.bf16.msra.mxu0 %v1008_v11  ;;  %631 = vmatpush1.bf16.msra.mxu1 %v1010_v12  ;;  %v54_v11 = vld [vmem:[%s1483_s0 + $0x130] sm:$0xff] }
  0x27   :  { %1040 = vmatprep.subr.msk.bf16.mxu0 %vm452_vm0, %v1025_v13  ;;  %1042 = vmatprep.subr.msk.bf16.mxu1 %vm452_vm0, %v1027_v15  ;;  %v62_v12 = vld [vmem:[%s1483_s0 + $0x170] sm:$0xff]  ;;  %v55_v13 = vld [vmem:[%s1483_s0 + $0x138] sm:$0xff]  ;;  %v984_v15 = vcombine.low %v38_v2, %v46_v4 }
  0x28   :  { %v1001_v17 = vcombine.high %v54_v11, %v62_v12  ;;  %v1003_v18 = vcombine.high %v55_v13, %v63_v14 }
  0x2a   :  { %592 = vmatpush1.bf16.msra.mxu0 %v466_v21  ;;  %633 = vmatpush1.bf16.msra.mxu1 %v472_v23  ;;  %v71_v21 = vld [vmem:[%s1483_s0 + $0x1b8] sm:$0xff]  ;;  %v1000_v23 = vcombine.low %v54_v11, %v62_v12 }
  0x2b   :  { %665 = vmatprep.subr.bf16.mxu0 %v965_v22  ;;  %706 = vmatprep.subr.bf16.mxu1 %v967_v24  ;;  %v79_v22 = vld [vmem:[%s1483_s0 + $0x1f8] sm:$0xff]  ;;  %v1002_v24 = vcombine.low %v55_v13, %v63_v14 }
  0x2c   :  { %v1019_v26 = vcombine.high %v71_v21, %v79_v22 }
  0x2d   :  { %1041 = vmatmul.mubr.msk.bf16.vlgmr.msra.gmra.mrb[4].mxu0 %vm448_vm1, %v1186_v51  ;;  %1043 = vmatmul.mubr.msk.bf16.vlgmr.msra.gmra.mrb[4].mxu1 %vm448_vm1, %v1186_v51 }
  0x2e   :  { %666 = vmatpush1.bf16.msra.mxu0 %v964_v29  ;;  %707 = vmatpush1.bf16.msra.mxu1 %v966_v30  ;;  %v1016_v29 = vcombine.low %v70_v19, %v78_v20  ;;  %v1033_v30 = vcombine.high %v86_v27, %v86_v27 }
  0x2f   :  { %667 = vmatprep.subr.bf16.mxu0 %v981_v31  ;;  %708 = vmatprep.subr.bf16.mxu1 %v983_v32  ;;  %v1032_v31 = vcombine.low %v86_v27, %v86_v27  ;;  %v1035_v32 = vcombine.high %v87_v28, %v87_v28 }
  0x30   :  { %697 = vmatprep.mubr.bf16.mxu0 %v1075_v3  ;;  %738 = vmatprep.mubr.bf16.mxu1 %v1075_v3 }
  0x31   :  { %v490_v34 = vsel %vm452_vm0, %v1032_v31, 0 }
  0x32   :  { %668 = vmatpush1.bf16.msra.mxu0 %v980_v37  ;;  %709 = vmatpush1.bf16.msra.mxu1 %v982_v38 }
  0x33   :  { %669 = vmatprep.subr.bf16.mxu0 %v997_v39  ;;  %710 = vmatprep.subr.bf16.mxu1 %v999_v40 }
  0x36   :  { %670 = vmatpush1.bf16.msra.mxu0 %v996_v45  ;;  %711 = vmatpush1.bf16.msra.mxu1 %v998_v46 }
  0x37   :  { %671 = vmatprep.subr.bf16.mxu0 %v1013_v47  ;;  %712 = vmatprep.subr.bf16.mxu1 %v1015_v48 }
  0x3a   :  { %672 = vmatpush1.bf16.msra.mxu0 %v1012_v52  ;;  %713 = vmatpush1.bf16.msra.mxu1 %v1014_v53 }
  0x3b   :  { %1044 = vmatprep.subr.msk.bf16.mxu0 %vm452_vm0, %v1029_v54  ;;  %1046 = vmatprep.subr.msk.bf16.mxu1 %vm452_vm0, %v1031_v56 }
  0x3e   :  { %674 = vmatpush1.bf16.msra.mxu0 %v478_v62  ;;  %715 = vmatpush1.bf16.msra.mxu1 %v484_v0 }
  0x3f   :  { %747 = vmatprep.subr.bf16.mxu0 %v969_v63  ;;  %788 = vmatprep.subr.bf16.mxu1 %v971_v1 }
  0x41   :  { %1045 = vmatmul.mubr.msk.bf16.vlgmr.msra.gmra.mrb[8].mxu0 %vm448_vm1, %v1186_v51  ;;  %1047 = vmatmul.mubr.msk.bf16.vlgmr.msra.gmra.mrb[8].mxu1 %vm448_vm1, %v1186_v51 }
  0x42   :  { %748 = vmatpush1.bf16.msra.mxu0 %v968_v7  ;;  %789 = vmatpush1.bf16.msra.mxu1 %v970_v8 }
  0x43   :  { %749 = vmatprep.subr.bf16.mxu0 %v985_v9  ;;  %790 = vmatprep.subr.bf16.mxu1 %v987_v10 }
  0x44   :  { %779 = vmatprep.mubr.bf16.mxu0 %v1075_v3  ;;  %820 = vmatprep.mubr.bf16.mxu1 %v1075_v3  ;;  %v1018_v3 = vcombine.low %v71_v21, %v79_v22 }
  0x46   :  { %750 = vmatpush1.bf16.msra.mxu0 %v984_v15  ;;  %791 = vmatpush1.bf16.msra.mxu1 %v986_v16 }
  0x47   :  { %751 = vmatprep.subr.bf16.mxu0 %v1001_v17  ;;  %792 = vmatprep.subr.bf16.mxu1 %v1003_v18 }
  0x4a   :  { %752 = vmatpush1.bf16.msra.mxu0 %v1000_v23  ;;  %793 = vmatpush1.bf16.msra.mxu1 %v1002_v24 }
  0x4b   :  { %753 = vmatprep.subr.bf16.mxu0 %v1017_v25  ;;  %794 = vmatprep.subr.bf16.mxu1 %v1019_v26 }
  0x4e   :  { %754 = vmatpush1.bf16.msra.mxu0 %v1016_v29  ;;  %795 = vmatpush1.bf16.msra.mxu1 %v1018_v3 }
  0x4f   :  { %1048 = vmatprep.subr.msk.bf16.mxu0 %vm452_vm0, %v1033_v30  ;;  %1050 = vmatprep.subr.msk.bf16.mxu1 %vm452_vm0, %v1035_v32 }
  0x52   :  { %756 = vmatpush1.bf16.msra.mxu0 %v490_v34  ;;  %797 = vmatpush1.bf16.msra.mxu1 %v496_v35 }
  0x55   :  { %1049 = vmatmul.mubr.msk.bf16.vlgmr.msra.gmra.mrb[12].mxu0 %vm448_vm1, %v1186_v51  ;;  %1051 = vmatmul.mubr.msk.bf16.vlgmr.msra.gmra.mrb[12].mxu1 %vm448_vm1, %v1186_v51 }
  0xec   :  { %v1360_v36 = vpop.f32.mrb[0].mxu0  ;;  %v1366_v39 = vpop.f32.mrb[0].mxu1 }
  0xed   :  { %v848_v37 = vmul.f32 %v1360_v36, %v1360_v36  ;;  %v1364_v38 = vpop.f32.mrb[1].mxu0  ;;  %v850_v43 = vmul.f32 %v1366_v39, %v1366_v39  ;;  %v1374_v51 = vpop.f32.mrb[1].mxu1 }
  0xee   :  { %v830_v40 = vadd.f32 %v1364_v38, %v1360_v36  ;;  %v849_v41 = vmul.f32 %v1364_v38, %v1364_v38  ;;  %v539_v42 = vpop.f32.mrb[2].mxu0  ;;  %v580_v45 = vpop.f32.mrb[2].mxu1  ;;  %v851_v48 = vmul.f32 %v1374_v51, %v1374_v51 }
  0xef   :  { %v540_v44 = vpop.f32.mrb[3].mxu0  ;;  %v581_v49 = vpop.f32.mrb[3].mxu1 }
  0xf0   :  { %v864_v46 = vadd.f32 %v849_v41, %v848_v37  ;;  %v831_v47 = vadd.f32 %v830_v40, %v1366_v39 }
  0xf2   :  { %v865_v50 = vadd.f32 %v864_v46, %v850_v43  ;;  %v832_v52 = vadd.f32 %v831_v47, %v1374_v51 }
  0xf4   :  { %v866_v53 = vadd.f32 %v865_v50, %v851_v48 }
 0x100   :  { %v1380_v54 = vpop.f32.mrb[4].mxu0  ;;  %v1387_v58 = vpop.f32.mrb[4].mxu1 }
 0x101   :  { %v833_v55 = vadd.f32 %v832_v52, %v1380_v54  ;;  %v852_v56 = vmul.f32 %v1380_v54, %v1380_v54  ;;  %v1385_v57 = vpop.f32.mrb[5].mxu0  ;;  %v1391_v61 = vpop.f32.mrb[5].mxu1  ;;  %v854_v0 = vmul.f32 %v1387_v58, %v1387_v58 }
 0x102   :  { %v853_v59 = vmul.f32 %v1385_v57, %v1385_v57  ;;  %v621_v60 = vpop.f32.mrb[6].mxu0  ;;  %v662_v2 = vpop.f32.mrb[6].mxu1  ;;  %v855_v7 = vmul.f32 %v1391_v61, %v1391_v61 }
 0x103   :  { %v867_v62 = vadd.f32 %v866_v53, %v852_v56  ;;  %v834_v63 = vadd.f32 %v833_v55, %v1385_v57  ;;  %v622_v1 = vpop.f32.mrb[7].mxu0  ;;  %v663_v4 = vpop.f32.mrb[7].mxu1  ;;  %v1076_v2 = vmov 1  }
 0x104   :  { %1056 = vset.pattern.permute.xlu0 %v1076_v2  ;;  %v829_v4 = vld [vmem:[%s1485_s2] sm:$0xff] }
 0x105   :  { %v868_v5 = vadd.f32 %v867_v62, %v853_v59  ;;  %v835_v6 = vadd.f32 %v834_v63, %v1387_v58 }
 0x107   :  { %v869_v8 = vadd.f32 %v868_v5, %v854_v0  ;;  %v836_v9 = vadd.f32 %v835_v6, %v1391_v61 }
 0x109   :  { %v870_v10 = vadd.f32 %v869_v8, %v855_v7 }
 0x114   :  { %v1400_v11 = vpop.f32.mrb[8].mxu0  ;;  %v1407_v15 = vpop.f32.mrb[8].mxu1 }
 0x115   :  { %v837_v12 = vadd.f32 %v836_v9, %v1400_v11  ;;  %v856_v13 = vmul.f32 %v1400_v11, %v1400_v11  ;;  %v1405_v14 = vpop.f32.mrb[9].mxu0  ;;  %v1411_v18 = vpop.f32.mrb[9].mxu1  ;;  %v858_v21 = vmul.f32 %v1407_v15, %v1407_v15 }
 0x116   :  { %v857_v16 = vmul.f32 %v1405_v14, %v1405_v14  ;;  %v703_v17 = vpop.f32.mrb[10].mxu0  ;;  %v744_v23 = vpop.f32.mrb[10].mxu1  ;;  %v859_v27 = vmul.f32 %v1411_v18, %v1411_v18 }
 0x117   :  { %v871_v19 = vadd.f32 %v870_v10, %v856_v13  ;;  %v838_v20 = vadd.f32 %v837_v12, %v1405_v14  ;;  %v704_v22 = vpop.f32.mrb[11].mxu0  ;;  %v745_v24 = vpop.f32.mrb[11].mxu1 }
 0x119   :  { %v872_v25 = vadd.f32 %v871_v19, %v857_v16  ;;  %v839_v26 = vadd.f32 %v838_v20, %v1407_v15 }
 0x11b   :  { %v873_v28 = vadd.f32 %v872_v25, %v858_v21  ;;  %v840_v29 = vadd.f32 %v839_v26, %v1411_v18 }
 0x11d   :  { %v874_v3 = vadd.f32 %v873_v28, %v859_v27 }
 0x128   :  { %v781_v30 = vpop.f32.mrb[12].mxu0  ;;  %v822_v34 = vpop.f32.mrb[12].mxu1 }
 0x129   :  { %v841_v31 = vadd.f32 %v840_v29, %v781_v30  ;;  %v860_v32 = vmul.f32 %v781_v30, %v781_v30  ;;  %v783_v33 = vpop.f32.mrb[13].mxu0  ;;  %v824_v40 = vpop.f32.mrb[13].mxu1  ;;  %v862_v43 = vmul.f32 %v822_v34, %v822_v34 }
 0x12a   :  { %v861_v35 = vmul.f32 %v783_v33, %v783_v33  ;;  %v785_v37 = vpop.f32.mrb[14].mxu0  ;;  %v826_v45 = vpop.f32.mrb[14].mxu1  ;;  %v863_v50 = vmul.f32 %v824_v40, %v824_v40 }
 0x12b   :  { %v875_v41 = vadd.f32 %v874_v3, %v860_v32  ;;  %v842_v42 = vadd.f32 %v841_v31, %v783_v33  ;;  %v786_v44 = vpop.f32.mrb[15].mxu0  ;;  %v827_v46 = vpop.f32.mrb[15].mxu1 }
 0x12d   :  { %v843_v47 = vadd.f32 %v842_v42, %v822_v34  ;;  %v876_v48 = vadd.f32 %v875_v41, %v861_v35 }
 0x12f   :  { %v844_v49 = vadd.f32 %v843_v47, %v824_v40  ;;  %v877_v52 = vadd.f32 %v876_v48, %v862_v43 }
 0x131   :  { %845 = vadd.xlane.f32.xlu0 %v844_v49  ;;  %v878_v53 = vadd.f32 %v877_v52, %v863_v50 }
 0x135   :  { %879 = vadd.xlane.f32.xlu0 %v878_v53 }
 0x1be   :  { %v846_v55 = vpop.xlane.xlu0 %845 }
 0x1bf   :  { %v847_v56 = vmul.f32 0.00048828125, %v846_v55 }
 0x1c1   :  { %v882_v60 = vmul.f32 %v847_v56, %v847_v56 }
 0x1c2   :  { %v880_v59 = vpop.xlane.xlu0 %879 }
 0x1c3   :  { %v881_v62 = vmul.f32 0.00048828125, %v880_v59 }
 0x1c5   :  { %v883_v63 = vsub.f32 %v881_v62, %v882_v60 }
 0x1c7   :  { %v884_v0 = vmax.f32 %v883_v63, 0.0 }
 0x1c9   :  { %v885_v1 = vadd.f32 1e-05, %v884_v0 }
 0x1cb   :  { %1073 = vrsqrt.f32 %v885_v1 }
 0x1d5   :  { %v1074_v5 = vpop.eup %1073 }
 0x1d6   :  { %v887_v6 = vmul.f32 %v1074_v5, %v829_v4 }
 0x1d8   :  { %v888_v7 = vmul.f32 %v887_v6, %v847_v56 }
 0x1da   :  { %890 = vrot.lane.b32.xlu1 %v888_v7, %s1077_s20 }
 0x1de   :  { %896 = vperm.xlu1 %1055, %v887_v6  }
 0x24c   :  { %v891_v8 = vpop.permute.xlu1 %890 }
 0x24d   :  { %v893_v9 = vsub.f32 %v829_v4, %v891_v8 }
 0x24f   :  { %917 = vperm.xlu0 %1056, %v893_v9  }
 0x25d   :  { %v897_v10 = vpop.permute.xlu1 %896 }
 0x25e   :  { %v899_v12 = vmul.f32 %v897_v10, %v1360_v36  ;;  %v900_v13 = vmul.f32 %v897_v10, %v1364_v38  ;;  %v901_v16 = vmul.f32 %v897_v10, %v1366_v39  ;;  %v902_v17 = vmul.f32 %v897_v10, %v1374_v51 }
 0x25f   :  { %v903_v19 = vmul.f32 %v897_v10, %v1380_v54  ;;  %v904_v20 = vmul.f32 %v897_v10, %v1385_v57  ;;  %v905_v21 = vmul.f32 %v897_v10, %v1387_v58  ;;  %v906_v22 = vmul.f32 %v897_v10, %v1391_v61 }
 0x260   :  { %v907_v23 = vmul.f32 %v897_v10, %v1400_v11  ;;  %v908_v24 = vmul.f32 %v897_v10, %v1405_v14  ;;  %v909_v36 = vmul.f32 %v897_v10, %v1407_v15  ;;  %v910_v38 = vmul.f32 %v897_v10, %v1411_v18 }
 0x261   :  { %v911_v25 = vmul.f32 %v897_v10, %v781_v30  ;;  %v912_v39 = vmul.f32 %v897_v10, %v783_v33  ;;  %v913_v26 = vmul.f32 %v897_v10, %v822_v34  ;;  %v914_v51 = vmul.f32 %v897_v10, %v824_v40 }
 0x2ce   :  { %v918_v27 = vpop.permute.xlu0 %917 }
 0x2cf   :  { %v920_v54 = vadd.f32 %v918_v27, %v899_v12  ;;  %v921_v28 = vadd.f32 %v918_v27, %v900_v13  ;;  %v922_v57 = vadd.f32 %v918_v27, %v901_v16  ;;  %v923_v29 = vadd.f32 %v918_v27, %v902_v17 }
 0x2d0   :  { %v924_v58 = vadd.f32 %v918_v27, %v903_v19  ;;  %v925_v3 = vadd.f32 %v918_v27, %v904_v20  ;;  %v926_v61 = vadd.f32 %v918_v27, %v905_v21  ;;  %v927_v31 = vadd.f32 %v918_v27, %v906_v22 }
 0x2d1   :  { %v928_v11 = vadd.f32 %v918_v27, %v907_v23  ;;  %v929_v32 = vadd.f32 %v918_v27, %v908_v24  ;;  %v930_v14 = vadd.f32 %v918_v27, %v909_v36  ;;  %v931_v35 = vadd.f32 %v918_v27, %v910_v38  ;;  %936 = vst [vmem:[%s1486_s3] sm:$0xff] %v920_v54 }
 0x2d2   :  { %937 = vst [vmem:[%s1486_s3 + $0x8] sm:$0xff] %v921_v28  ;;  %938 = vst [vmem:[%s1486_s3 + $0x10] sm:$0xff] %v922_v57  ;;  %v932_v15 = vadd.f32 %v918_v27, %v911_v25  ;;  %v933_v18 = vadd.f32 %v918_v27, %v912_v39  ;;  %v934_v30 = vadd.f32 %v918_v27, %v913_v26 }
 0x2d3   :  { %939 = vst [vmem:[%s1486_s3 + $0x18] sm:$0xff] %v923_v29  ;;  %v935_v33 = vadd.f32 %v918_v27, %v914_v51  ;;  %940 = vst [vmem:[%s1486_s3 + $0x20] sm:$0xff] %v924_v58 }
 0x2d4   :  { %941 = vst [vmem:[%s1486_s3 + $0x28] sm:$0xff] %v925_v3  ;;  %942 = vst [vmem:[%s1486_s3 + $0x30] sm:$0xff] %v926_v61 }
 0x2d5   :  { %943 = vst [vmem:[%s1486_s3 + $0x38] sm:$0xff] %v927_v31  ;;  %944 = vst [vmem:[%s1486_s3 + $0x40] sm:$0xff] %v928_v11 }
 0x2d6   :  { %945 = vst [vmem:[%s1486_s3 + $0x48] sm:$0xff] %v929_v32  ;;  %946 = vst [vmem:[%s1486_s3 + $0x50] sm:$0xff] %v930_v14 }
 0x2d7   :  { %947 = vst [vmem:[%s1486_s3 + $0x58] sm:$0xff] %v931_v35  ;;  %948 = vst [vmem:[%s1486_s3 + $0x60] sm:$0xff] %v932_v15 }
 0x2d8   :  { %949 = vst [vmem:[%s1486_s3 + $0x68] sm:$0xff] %v933_v18  ;;  %950 = vst [vmem:[%s1486_s3 + $0x70] sm:$0xff] %v934_v30 }
 0x2d9   :  { %951 = vst [vmem:[%s1486_s3 + $0x78] sm:$0xff] %v935_v33 }

</bundles_post_ra>
